<compile_context>
chip_gen: v6e
topology: v6e:2x2x1
jax: 0.10.0
libtpu: 0.0.40
codegen_flags: <defaults>
</compile_context>

<pallas_src>
import jax
import jax.numpy as jnp
from jax.experimental import pallas as pl
from jax.experimental.pallas import tpu as pltpu

EPS = 1e-5      # nn.GroupNorm default eps
OUT_W = 128     # lane-dense padded width of the 2-wide regression head


def _round_up(v, m):
    return (v + m - 1) // m * m


def _testnet_half_kernel(x_ref, w1_ref, w2_ref, vec_ref, w3_ref, b3_ref,
                         out_ref):
    # x_ref  : (tile, n_actor) bf16       w1/w2 : (n_actor, n_actor) bf16
    # vec_ref: (8, n_actor) f32 packed [b1, g1, be1, b2, g2, be2, 0, 0]
    # w3_ref : (n_actor, OUT_W) bf16 (cols >= 2 are zero)
    # b3_ref : (1, OUT_W) f32             out_ref: (tile, OUT_W) f32
    x_bf = x_ref[...]
    v = vec_ref[...]
    b1, g1, be1 = v[0:1, :], v[1:2, :], v[2:3, :]
    b2, g2, be2 = v[3:4, :], v[4:5, :], v[5:6, :]

    def gn1(h, g, b):
        # GroupNorm(ng=1) on 2-D input == per-row layer-norm, biased variance.
        # Single-pass stats: var = E[h^2] - mu^2 (f32, values are O(1) here).
        mu = jnp.mean(h, axis=-1, keepdims=True)
        m2 = jnp.mean(h * h, axis=-1, keepdims=True)
        var = jnp.maximum(m2 - mu * mu, 0.0)
        return (h - mu) * jax.lax.rsqrt(var + EPS) * g + b

    # --- LinearRes: linear1 -> GroupNorm(1) -> ReLU ------------------------
    h = jnp.dot(x_bf, w1_ref[...], preferred_element_type=jnp.float32) + b1
    h = jnp.maximum(gn1(h, g1, be1), 0.0)

    # --- LinearRes: linear2 -> GroupNorm(1), residual, ReLU ----------------
    h = jnp.dot(h.astype(jnp.bfloat16), w2_ref[...],
                preferred_element_type=jnp.float32) + b2
    h = gn1(h, g2, be2)
    h = jnp.maximum(h + x_bf.astype(jnp.float32), 0.0)

    # --- final Linear(n_actor, 2), zero-padded to OUT_W lanes --------------
    reg = jnp.dot(h.astype(jnp.bfloat16), w3_ref[...],
                  preferred_element_type=jnp.float32) + b3_ref[...]
    out_ref[...] = reg.astype(out_ref.dtype)


def _has_two_tensorcores():
    """True for chips where 'parallel' grid axes shard across 2 TensorCores."""
    try:
        kind = jax.devices()[0].device_kind.lower()
    except Exception:
        return False
    if any(t in kind for t in ("v5e", "v5 lite", "v5lite", "lite", "v6")):
        return False            # single TensorCore per chip
    return any(t in kind for t in ("v4", "v5p", "v7"))


def _pick_tiling(m, tile_m, multi_tc):
    tile_m = max(8, _round_up(tile_m, 8))
    if multi_tc:
        # Even number of 'parallel' steps so both TensorCores get equal work.
        steps = _round_up(max(2, pl.cdiv(m, tile_m)), 2)
        tile = max(8, _round_up(pl.cdiv(m, steps), 8))
    else:
        # Serial grid on one TC: a single step when it fits (no per-step
        # overhead); otherwise the largest requested tile.
        tile = min(tile_m, _round_up(m, 8))
        steps = pl.cdiv(m, tile)
    return tile, steps, tile * steps


def prepare_params(params):
    """Cast/pack the f32 'PyTorch-style' params for the kernel (call once)."""
    n_actor = params["w1"].shape[0]
    vec_pack = jnp.concatenate(
        [params["b1"], params["g1"], params["be1"],
         params["b2"], params["g2"], params["be2"],
         jnp.zeros((2, n_actor), jnp.float32)], axis=0)
    w3p = jnp.zeros((n_actor, OUT_W), jnp.float32).at[:, :2].set(params["w3"])
    b3p = jnp.zeros((1, OUT_W), jnp.float32).at[:, :2].set(params["b3"])
    return {
        "w1": params["w1"].astype(jnp.bfloat16),
        "w2": params["w2"].astype(jnp.bfloat16),
        "w3p": w3p.astype(jnp.bfloat16),
        "vec_pack": vec_pack,
        "b3p": b3p,
    }


def testnet_half_forward(prep, actors, actor_idcs, actor_ctrs, *, tile_m=1024):
    """Pallas TestNet_Half forward.

    prep       : dict from prepare_params()
    actors     : (M, n_actor) f32
    actor_idcs : list of int32 index arrays (one per scene, partitioning rows)
    actor_ctrs : list of (len(idcs_i), 2) f32 center arrays
    returns    : list of (len(idcs_i), 2) f32 arrays
    """
    m, n_actor = actors.shape
    tile, steps, m_pad = _pick_tiling(m, tile_m, _has_two_tensorcores())

    x = actors.astype(jnp.bfloat16)               # halve HBM read traffic
    if m_pad != m:                                # ragged tail: zero-pad rows
        x = jnp.pad(x, ((0, m_pad - m), (0, 0)))  # (padded rows stay per-row)

    row_x = pl.BlockSpec((tile, n_actor), lambda i: (i, 0))
    row_o = pl.BlockSpec((tile, OUT_W), lambda i: (i, 0))
    full = lambda shp: pl.BlockSpec(shp, lambda i: (0,) * len(shp))

    grid_spec = pltpu.PrefetchScalarGridSpec(
        num_scalar_prefetch=0,
        grid=(steps,),
        in_specs=[
            row_x,                                # actor rows (bf16)
            full((n_actor, n_actor)),             # w1 (bf16)
            full((n_actor, n_actor)),             # w2 (bf16)
            full((8, n_actor)),                   # packed b1,g1,be1,b2,g2,be2
            full((n_actor, OUT_W)),               # w3 padded (bf16)
            full((1, OUT_W)),                     # b3 padded
        ],
        out_specs=row_o,
    )

    flops = 2 * m_pad * n_actor * (2 * n_actor + OUT_W)
    bytes_accessed = (m_pad * n_actor * 2 + m_pad * OUT_W * 4
                      + 2 * n_actor * n_actor * 2 + n_actor * OUT_W * 2
                      + 8 * n_actor * 4 + OUT_W * 4)

    out = pl.pallas_call(
        _testnet_half_kernel,
        out_shape=jax.ShapeDtypeStruct((m_pad, OUT_W), jnp.float32),
        grid_spec=grid_spec,
        compiler_params=pltpu.CompilerParams(
            dimension_semantics=("parallel",)),
        cost_estimate=pl.CostEstimate(
            flops=flops, transcendentals=2 * m_pad,
            bytes_accessed=bytes_accessed),
    )(x, prep["w1"], prep["w2"], prep["vec_pack"], prep["w3p"], prep["b3p"])

    reg = out[:m, :2]
    # Per-scene split + center add on the tiny (M, 2) result (wrapper glue).
    # TODO(synk): rows covered by no / multiple idcs (never happens in LaneGCN,
    # since idcs partition the rows) would need the module's sequential
    # in-place '+=' semantics; intentionally not modeled.
    return [reg[idcs] + ctrs.reshape(-1, 2).astype(reg.dtype)
            for idcs, ctrs in zip(actor_idcs, actor_ctrs)]


# ----------------------------- reference ----------------------------------
def _groupnorm1(h, g, b):
    mu = h.mean(-1, keepdims=True)
    var = ((h - mu) ** 2).mean(-1, keepdims=True)
    return (h - mu) * jax.lax.rsqrt(var + EPS) * g + b


def testnet_half_reference(params, actors, actor_idcs, actor_ctrs):
    """Plain-JAX reference mirroring the PyTorch module, applying the same
    bf16 operand rounding the kernel uses (f32 accumulation throughout), so
    the comparison isolates kernel numerics from the deliberate
    mixed-precision choice."""
    hi = jax.lax.Precision.HIGHEST
    bf = lambda a: a.astype(jnp.bfloat16).astype(jnp.float32)
    x = bf(actors)
    h = jnp.dot(x, bf(params["w1"]), precision=hi) + params["b1"]
    h = jnp.maximum(_groupnorm1(h, params["g1"], params["be1"]), 0.0)
    h = jnp.dot(bf(h), bf(params["w2"]), precision=hi) + params["b2"]
    h = _groupnorm1(h, params["g2"], params["be2"])
    h = jnp.maximum(h + x, 0.0)
    reg = jnp.dot(bf(h), bf(params["w3"]), precision=hi) + params["b3"]
    return [reg[idcs] + ctrs.reshape(-1, 2)
            for idcs, ctrs in zip(actor_idcs, actor_ctrs)]


def init_params(key, n_actor):
    """Deterministic synthetic parameters (weights stored as (in, out))."""
    ks = jax.random.split(key, 10)
    s = 1.0 / float(n_actor) ** 0.5
    return {
        "w1": s * jax.random.normal(ks[0], (n_actor, n_actor), jnp.float32),
        "b1": 0.1 * jax.random.normal(ks[1], (1, n_actor), jnp.float32),
        "g1": 1.0 + 0.1 * jax.random.normal(ks[2], (1, n_actor), jnp.float32),
        "be1": 0.1 * jax.random.normal(ks[3], (1, n_actor), jnp.float32),
        "w2": s * jax.random.normal(ks[4], (n_actor, n_actor), jnp.float32),
        "b2": 0.1 * jax.random.normal(ks[5], (1, n_actor), jnp.float32),
        "g2": 1.0 + 0.1 * jax.random.normal(ks[6], (1, n_actor), jnp.float32),
        "be2": 0.1 * jax.random.normal(ks[7], (1, n_actor), jnp.float32),
        "w3": s * jax.random.normal(ks[8], (n_actor, 2), jnp.float32),
        "b3": 0.1 * jax.random.normal(ks[9], (1, 2), jnp.float32),
    }


if __name__ == "__main__":
    key = jax.random.PRNGKey(0)
    k_p, k_a, k_c1, k_c2 = jax.random.split(key, 4)

    n_actor = 128                 # LaneGCN's production feature width
    counts = [37, 91]             # two "scenes", ragged actor counts (M = 128)
    m = sum(counts)

    params = init_params(k_p, n_actor)
    prep = prepare_params(params)
    actors = jax.random.normal(k_a, (m, n_actor), jnp.float32)

    offsets = [0]
    for c in counts:
        offsets.append(offsets[-1] + c)
    actor_idcs = [jnp.arange(offsets[i], offsets[i + 1], dtype=jnp.int32)
                  for i in range(len(counts))]
    actor_ctrs = [jax.random.normal(k, (c, 2), jnp.float32)
                  for k, c in zip([k_c1, k_c2], counts)]

    outs = testnet_half_forward(prep, actors, actor_idcs, actor_ctrs,
                                tile_m=1024)
    outs = jax.block_until_ready(outs)

    refs = testnet_half_reference(params, actors, actor_idcs, actor_ctrs)
    for o, r, c in zip(outs, refs, counts):
        assert o.shape == (c, 2)
        assert jnp.allclose(o, r, atol=1e-3, rtol=1e-3), "mismatch vs reference"

    print("KERNEL_OK")
</pallas_src>

<mosaic_0001>
module attributes {stable_mosaic.version = 11 : i64} {
  func.func @_testnet_half_kernel(%arg0: i32, %arg1: memref<128x128xbf16, #tpu.memory_space<vmem>>, %arg2: memref<128x128xbf16, #tpu.memory_space<vmem>>, %arg3: memref<128x128xbf16, #tpu.memory_space<vmem>>, %arg4: memref<8x128xf32, #tpu.memory_space<vmem>>, %arg5: memref<128x128xbf16, #tpu.memory_space<vmem>>, %arg6: memref<1x128xf32, #tpu.memory_space<vmem>>, %arg7: memref<128x128xf32, #tpu.memory_space<vmem>>) attributes {dimension_semantics = [#tpu.dimension_semantics<parallel>], iteration_bounds = array<i64: 1>, scalar_prefetch = 0 : i64, scratch_operands = 0 : i64, tpu.core_type = #tpu.core_type<tc>, window_params = [{transform_indices = @transform_0, window_bounds = array<i64: 128, 128>}, {pipeline_mode = #tpu.pipeline_mode<synchronous>, transform_indices = @transform_1, window_bounds = array<i64: 128, 128>}, {pipeline_mode = #tpu.pipeline_mode<synchronous>, transform_indices = @transform_2, window_bounds = array<i64: 128, 128>}, {pipeline_mode = #tpu.pipeline_mode<synchronous>, transform_indices = @transform_3, window_bounds = array<i64: 8, 128>}, {pipeline_mode = #tpu.pipeline_mode<synchronous>, transform_indices = @transform_4, window_bounds = array<i64: 128, 128>}, {pipeline_mode = #tpu.pipeline_mode<synchronous>, transform_indices = @transform_5, window_bounds = array<i64: 1, 128>}, {transform_indices = @transform_6, window_bounds = array<i64: 128, 128>}]} {
    %c0 = arith.constant 0 : index
    %c0_0 = arith.constant 0 : index
    %0 = vector.load %arg1[%c0, %c0_0] : memref<128x128xbf16, #tpu.memory_space<vmem>>, vector<128x128xbf16>
    %c0_1 = arith.constant 0 : index
    %c0_2 = arith.constant 0 : index
    %1 = vector.load %arg4[%c0_1, %c0_2] : memref<8x128xf32, #tpu.memory_space<vmem>>, vector<8x128xf32>
    %2 = vector.extract_strided_slice %1 {offsets = [0, 0], sizes = [1, 128], strides = [1, 1]} : vector<8x128xf32> to vector<1x128xf32>
    %3 = vector.extract_strided_slice %1 {offsets = [1, 0], sizes = [1, 128], strides = [1, 1]} : vector<8x128xf32> to vector<1x128xf32>
    %4 = vector.extract_strided_slice %1 {offsets = [2, 0], sizes = [1, 128], strides = [1, 1]} : vector<8x128xf32> to vector<1x128xf32>
    %5 = vector.extract_strided_slice %1 {offsets = [3, 0], sizes = [1, 128], strides = [1, 1]} : vector<8x128xf32> to vector<1x128xf32>
    %6 = vector.extract_strided_slice %1 {offsets = [4, 0], sizes = [1, 128], strides = [1, 1]} : vector<8x128xf32> to vector<1x128xf32>
    %7 = vector.extract_strided_slice %1 {offsets = [5, 0], sizes = [1, 128], strides = [1, 1]} : vector<8x128xf32> to vector<1x128xf32>
    %c0_3 = arith.constant 0 : index
    %c0_4 = arith.constant 0 : index
    %8 = vector.load %arg2[%c0_3, %c0_4] : memref<128x128xbf16, #tpu.memory_space<vmem>>, vector<128x128xbf16>
    %cst = arith.constant dense<0.000000e+00> : vector<128x128xf32>
    %9 = tpu.matmul %0, %8, %cst {dimension_numbers = #tpu.dot_dimension_numbers<[1], [0], [0], [1], [0, 0, 1, 1], [], []>} : vector<128x128xbf16>, vector<128x128xbf16>, vector<128x128xf32> -> vector<128x128xf32>
    %10 = vector.broadcast %2 : vector<1x128xf32> to vector<128x128xf32>
    %11 = arith.addf %9, %10 : vector<128x128xf32>
    %cst_5 = arith.constant dense<0.000000e+00> : vector<128xf32>
    %12 = vector.multi_reduction <add>, %11, %cst_5 [1] : vector<128x128xf32> to vector<128xf32>
    %13 = vector.shape_cast %12 : vector<128xf32> to vector<128x1xf32>
    %cst_6 = arith.constant 1.280000e+02 : f32
    %14 = vector.broadcast %cst_6 : f32 to vector<128x1xf32>
    %15 = arith.divf %13, %14 : vector<128x1xf32>
    %16 = arith.mulf %11, %11 : vector<128x128xf32>
    %cst_7 = arith.constant dense<0.000000e+00> : vector<128xf32>
    %17 = vector.multi_reduction <add>, %16, %cst_7 [1] : vector<128x128xf32> to vector<128xf32>
    %18 = vector.shape_cast %17 : vector<128xf32> to vector<128x1xf32>
    %cst_8 = arith.constant 1.280000e+02 : f32
    %19 = vector.broadcast %cst_8 : f32 to vector<128x1xf32>
    %20 = arith.divf %18, %19 : vector<128x1xf32>
    %21 = arith.mulf %15, %15 : vector<128x1xf32>
    %22 = arith.subf %20, %21 : vector<128x1xf32>
    %cst_9 = arith.constant 0.000000e+00 : f32
    %23 = vector.broadcast %cst_9 : f32 to vector<128x1xf32>
    %24 = arith.maximumf %22, %23 : vector<128x1xf32>
    %25 = vector.broadcast %15 : vector<128x1xf32> to vector<128x128xf32>
    %26 = arith.subf %11, %25 : vector<128x128xf32>
    %cst_10 = arith.constant 9.99999974E-6 : f32
    %27 = vector.broadcast %cst_10 : f32 to vector<128x1xf32>
    %28 = arith.addf %24, %27 : vector<128x1xf32>
    %29 = math.rsqrt %28 : vector<128x1xf32>
    %30 = vector.broadcast %29 : vector<128x1xf32> to vector<128x128xf32>
    %31 = arith.mulf %26, %30 : vector<128x128xf32>
    %32 = vector.broadcast %3 : vector<1x128xf32> to vector<128x128xf32>
    %33 = arith.mulf %31, %32 : vector<128x128xf32>
    %34 = vector.broadcast %4 : vector<1x128xf32> to vector<128x128xf32>
    %35 = arith.addf %33, %34 : vector<128x128xf32>
    %cst_11 = arith.constant 0.000000e+00 : f32
    %36 = vector.broadcast %cst_11 : f32 to vector<128x128xf32>
    %37 = arith.maximumf %35, %36 : vector<128x128xf32>
    %38 = arith.truncf %37 : vector<128x128xf32> to vector<128x128xbf16>
    %c0_12 = arith.constant 0 : index
    %c0_13 = arith.constant 0 : index
    %39 = vector.load %arg3[%c0_12, %c0_13] : memref<128x128xbf16, #tpu.memory_space<vmem>>, vector<128x128xbf16>
    %cst_14 = arith.constant dense<0.000000e+00> : vector<128x128xf32>
    %40 = tpu.matmul %38, %39, %cst_14 {dimension_numbers = #tpu.dot_dimension_numbers<[1], [0], [0], [1], [0, 0, 1, 1], [], []>} : vector<128x128xbf16>, vector<128x128xbf16>, vector<128x128xf32> -> vector<128x128xf32>
    %41 = vector.broadcast %5 : vector<1x128xf32> to vector<128x128xf32>
    %42 = arith.addf %40, %41 : vector<128x128xf32>
    %cst_15 = arith.constant dense<0.000000e+00> : vector<128xf32>
    %43 = vector.multi_reduction <add>, %42, %cst_15 [1] : vector<128x128xf32> to vector<128xf32>
    %44 = vector.shape_cast %43 : vector<128xf32> to vector<128x1xf32>
    %cst_16 = arith.constant 1.280000e+02 : f32
    %45 = vector.broadcast %cst_16 : f32 to vector<128x1xf32>
    %46 = arith.divf %44, %45 : vector<128x1xf32>
    %47 = arith.mulf %42, %42 : vector<128x128xf32>
    %cst_17 = arith.constant dense<0.000000e+00> : vector<128xf32>
    %48 = vector.multi_reduction <add>, %47, %cst_17 [1] : vector<128x128xf32> to vector<128xf32>
    %49 = vector.shape_cast %48 : vector<128xf32> to vector<128x1xf32>
    %cst_18 = arith.constant 1.280000e+02 : f32
    %50 = vector.broadcast %cst_18 : f32 to vector<128x1xf32>
    %51 = arith.divf %49, %50 : vector<128x1xf32>
    %52 = arith.mulf %46, %46 : vector<128x1xf32>
    %53 = arith.subf %51, %52 : vector<128x1xf32>
    %cst_19 = arith.constant 0.000000e+00 : f32
    %54 = vector.broadcast %cst_19 : f32 to vector<128x1xf32>
    %55 = arith.maximumf %53, %54 : vector<128x1xf32>
    %56 = vector.broadcast %46 : vector<128x1xf32> to vector<128x128xf32>
    %57 = arith.subf %42, %56 : vector<128x128xf32>
    %cst_20 = arith.constant 9.99999974E-6 : f32
    %58 = vector.broadcast %cst_20 : f32 to vector<128x1xf32>
    %59 = arith.addf %55, %58 : vector<128x1xf32>
    %60 = math.rsqrt %59 : vector<128x1xf32>
    %61 = vector.broadcast %60 : vector<128x1xf32> to vector<128x128xf32>
    %62 = arith.mulf %57, %61 : vector<128x128xf32>
    %63 = vector.broadcast %6 : vector<1x128xf32> to vector<128x128xf32>
    %64 = arith.mulf %62, %63 : vector<128x128xf32>
    %65 = vector.broadcast %7 : vector<1x128xf32> to vector<128x128xf32>
    %66 = arith.addf %64, %65 : vector<128x128xf32>
    %67 = arith.extf %0 : vector<128x128xbf16> to vector<128x128xf32>
    %68 = arith.addf %66, %67 : vector<128x128xf32>
    %cst_21 = arith.constant 0.000000e+00 : f32
    %69 = vector.broadcast %cst_21 : f32 to vector<128x128xf32>
    %70 = arith.maximumf %68, %69 : vector<128x128xf32>
    %71 = arith.truncf %70 : vector<128x128xf32> to vector<128x128xbf16>
    %c0_22 = arith.constant 0 : index
    %c0_23 = arith.constant 0 : index
    %72 = vector.load %arg5[%c0_22, %c0_23] : memref<128x128xbf16, #tpu.memory_space<vmem>>, vector<128x128xbf16>
    %cst_24 = arith.constant dense<0.000000e+00> : vector<128x128xf32>
    %73 = tpu.matmul %71, %72, %cst_24 {dimension_numbers = #tpu.dot_dimension_numbers<[1], [0], [0], [1], [0, 0, 1, 1], [], []>} : vector<128x128xbf16>, vector<128x128xbf16>, vector<128x128xf32> -> vector<128x128xf32>
    %c0_25 = arith.constant 0 : index
    %c0_26 = arith.constant 0 : index
    %74 = vector.load %arg6[%c0_25, %c0_26] : memref<1x128xf32, #tpu.memory_space<vmem>>, vector<1x128xf32>
    %75 = vector.broadcast %74 : vector<1x128xf32> to vector<128x128xf32>
    %76 = arith.addf %73, %75 : vector<128x128xf32>
    %c0_27 = arith.constant 0 : index
    %c0_28 = arith.constant 0 : index
    %77 = vector.load %arg7[%c0_27, %c0_28] : memref<128x128xf32, #tpu.memory_space<vmem>>, vector<128x128xf32>
    tpu.vector_store %arg7[%c0_27, %c0_28], %76 {strides = array<i32>} : memref<128x128xf32, #tpu.memory_space<vmem>>, vector<128x128xf32>,
    return
  }
  func.func @transform_0(%arg0: i32) -> (i32, i32) {
    %c0_i32 = arith.constant 0 : i32
    %c0_i32_0 = arith.constant 0 : i32
    return %arg0, %c0_i32 : i32, i32
  }
  func.func @transform_1(%arg0: i32) -> (i32, i32) {
    %c0_i32 = arith.constant 0 : i32
    %c0_i32_0 = arith.constant 0 : i32
    %c0_i32_1 = arith.constant 0 : i32
    return %c0_i32, %c0_i32_0 : i32, i32
  }
  func.func @transform_2(%arg0: i32) -> (i32, i32) {
    %c0_i32 = arith.constant 0 : i32
    %c0_i32_0 = arith.constant 0 : i32
    %c0_i32_1 = arith.constant 0 : i32
    return %c0_i32, %c0_i32_0 : i32, i32
  }
  func.func @transform_3(%arg0: i32) -> (i32, i32) {
    %c0_i32 = arith.constant 0 : i32
    %c0_i32_0 = arith.constant 0 : i32
    %c0_i32_1 = arith.constant 0 : i32
    return %c0_i32, %c0_i32_0 : i32, i32
  }
  func.func @transform_4(%arg0: i32) -> (i32, i32) {
    %c0_i32 = arith.constant 0 : i32
    %c0_i32_0 = arith.constant 0 : i32
    %c0_i32_1 = arith.constant 0 : i32
    return %c0_i32, %c0_i32_0 : i32, i32
  }
  func.func @transform_5(%arg0: i32) -> (i32, i32) {
    %c0_i32 = arith.constant 0 : i32
    %c0_i32_0 = arith.constant 0 : i32
    %c0_i32_1 = arith.constant 0 : i32
    return %c0_i32, %c0_i32_0 : i32, i32
  }
  func.func @transform_6(%arg0: i32) -> (i32, i32) {
    %c0_i32 = arith.constant 0 : i32
    %c0_i32_0 = arith.constant 0 : i32
    return %arg0, %c0_i32 : i32, i32
  }
}

</mosaic_0001>

<bundles_post_ra>
// kernel: tpu_custom_call.1
= control target key start
LH: loop header
LB: loop body
LE: loop exit
PB: predicated region body
PF: predicated region fallthrough
CT: control target
= control target key end

     0   :  { %11 = vsyncpa [#allocation3], 0  ;;  %s2289_s0 = inlined_call_operand.hbm [shape: bf16[128,128], index: 0, kind: input, shape index: {}]   ;;  %s2290_s1 = inlined_call_operand.hbm [shape: bf16[128,128], index: 1, kind: input, shape index: {}]   ;;  %s2291_s2 = inlined_call_operand.hbm [shape: bf16[128,128], index: 2, kind: input, shape index: {}]   ;;  %s2292_s3 = inlined_call_operand.hbm [shape: f32[8,128], index: 3, kind: input, shape index: {}]   ;;  %s2293_s4 = inlined_call_operand.hbm [shape: bf16[128,128], index: 4, kind: input, shape index: {}]   ;;  %s2294_s5 = inlined_call_operand.vmem [shape: f32[1,128], index: 5, kind: input, shape index: {}]   ;;  %s2295_s6 = inlined_call_operand.hbm [shape: f32[128,128], index: 6, kind: output, shape index: {}]  }
   0x1   :  { %12 = vsyncpa [#allocation6], 0 }
   0x2   :  { %13 = vsyncpa [#allocation9], 0 }
   0x3   :  { %14 = vsyncpa [#allocation4], 0  ;;  %s1742_s21 = smov [#allocation5]   ;;  %s1743_s23 = smov [#allocation8]  }
   0x4   :  { %s32_s22 = sshll.u32 %s1742_s21, 4  ;;  %s57_s24 = sshll.u32 %s1743_s23, 4  ;;  %s33_s22 = int_to_ptr.vmem [resolvable:$true] %s32_s22  ;;  %s58_s24 = int_to_ptr.vmem [resolvable:$true] %s57_s24 }
   0x5   :  { %s1622_s25 = scalar_lea.vmem %s33_s22, 1024  ;;  %p1627_p1 = scmp.lt.s32.totalorder %s33_s22, %s33_s22 }
   0x6   :  { %p1623_p0 = scmp.ne.s32.totalorder %s33_s22, %s1622_s25  ;;  %p1628_p2 = scmp.lt.s32.totalorder %s1622_s25, %s1622_s25 }
   0x8   :  { %p1629_p3 = por %p1628_p2, %p1627_p1 }
   0xa   :  { %p1630_p4 = pnand %p1629_p3, %p1623_p0 }
   0xc   :  { %1633 = shalt.err (!%p1630_p4)
}
   0xd   :  { %s1744_s26 = smov 64   ;;  %s1745_s27 = smov 4  }
   0xe   :  { %38 = dma.hbm_to_vmem [thread:$0]  %s2290_s1, 1024, %s33_s22, [#allocation6], %s1744_s26, %s1744_s26, %s1745_s27  }
   0xf   :  { %s1642_s30 = scalar_lea.vmem %s58_s24, 128  ;;  %p1647_p6 = scmp.lt.s32.totalorder %s58_s24, %s58_s24 }
  0x10   :  { %p1643_p5 = scmp.ne.s32.totalorder %s58_s24, %s1642_s30  ;;  %p1648_p7 = scmp.lt.s32.totalorder %s1642_s30, %s1642_s30 }
  0x12   :  { %p1649_p8 = por %p1648_p7, %p1647_p6 }
  0x14   :  { %p1650_p9 = pnand %p1649_p8, %p1643_p5 }
  0x16   :  { %1653 = shalt.err (!%p1650_p9)
}
  0x17   :  { %60 = dma.hbm_to_vmem [thread:$0]  %s2292_s3, 128, %s58_s24, [#allocation9]  }
  0x18   :  { %s1746_s9 = smov [#allocation2]   ;;  %s1747_s11 = smov [#allocation7]  }
  0x19   :  { %s20_s10 = sshll.u32 %s1746_s9, 4  ;;  %s44_s12 = sshll.u32 %s1747_s11, 4  ;;  %s21_s10 = int_to_ptr.vmem [resolvable:$true] %s20_s10  ;;  %s45_s12 = int_to_ptr.vmem [resolvable:$true] %s44_s12 }
  0x1a   :  { %s1662_s13 = scalar_lea.vmem %s21_s10, 1024  ;;  %p1667_p11 = scmp.lt.s32.totalorder %s21_s10, %s21_s10 }
  0x1b   :  { %p1663_p10 = scmp.ne.s32.totalorder %s21_s10, %s1662_s13  ;;  %p1668_p12 = scmp.lt.s32.totalorder %s1662_s13, %s1662_s13 }
  0x1d   :  { %p1669_p13 = por %p1668_p12, %p1667_p11 }
  0x1f   :  { %p1670_p0 = pnand %p1669_p13, %p1663_p10 }
  0x21   :  { %1673 = shalt.err (!%p1670_p0)
}
  0x22   :  { %26 = dma.hbm_to_vmem [thread:$0]  %s2289_s0, 1024, %s21_s10, [#allocation3], %s1744_s26, %s1744_s26, %s1745_s27  }
  0x23   :  { %s1682_s3 = scalar_lea.vmem %s45_s12, 1024  ;;  %p1687_p2 = scmp.lt.s32.totalorder %s45_s12, %s45_s12 }
  0x24   :  { %p1683_p1 = scmp.ne.s32.totalorder %s45_s12, %s1682_s3  ;;  %p1688_p3 = scmp.lt.s32.totalorder %s1682_s3, %s1682_s3 }
  0x26   :  { %p1689_p4 = por %p1688_p3, %p1687_p2 }
  0x28   :  { %p1690_p5 = pnand %p1689_p4, %p1683_p1 }
  0x2a   :  { %1693 = shalt.err (!%p1690_p5)
}
  0x2b   :  { %50 = dma.hbm_to_vmem [thread:$0]  %s2291_s2, 1024, %s45_s12, [#allocation6], %s1744_s26, %s1744_s26, %s1745_s27  }
  0x2c   :  { %s1748_s17 = smov [#allocation10]  }
  0x2d   :  { %s66_s18 = sshll.u32 %s1748_s17, 4  ;;  %s67_s18 = int_to_ptr.vmem [resolvable:$true] %s66_s18 }
  0x2e   :  { %s1702_s19 = scalar_lea.vmem %s67_s18, 1024  ;;  %p1707_p7 = scmp.lt.s32.totalorder %s67_s18, %s67_s18 }
  0x2f   :  { %p1703_p6 = scmp.ne.s32.totalorder %s67_s18, %s1702_s19  ;;  %p1708_p8 = scmp.lt.s32.totalorder %s1702_s19, %s1702_s19 }
  0x31   :  { %p1709_p9 = por %p1708_p8, %p1707_p7 }
  0x33   :  { %p1710_p10 = pnand %p1709_p9, %p1703_p6 }
  0x35   :  { %1713 = shalt.err (!%p1710_p10)
}
  0x36   :  { %72 = dma.hbm_to_vmem [thread:$0]  %s2293_s4, 1024, %s67_s18, [#allocation9], %s1744_s26, %s1744_s26, %s1745_s27  }
  0x37   :  { %1734 = dma.done.wait [#allocation3], 1024  }
  0x38   :  { %1735 = vsyncadd [#allocation3], 4294966272 }
  0x39   :  { %1736 = dma.done.wait [#allocation6], 2048  }
  0x3a   :  { %1737 = vsyncadd [#allocation6], 4294965248 }
  0x3b   :  { %1738 = dma.done.wait [#allocation9], 1152  }
  0x3c   :  { %1739 = vsyncadd [#allocation9], 4294966144  ;;  %v1501_v0 = vld [vmem:[#allocation5 + $0x38] sm:$0xff]   ;;  %v1502_v1 = vld [vmem:[#allocation5 + $0x30] sm:$0xff]   ;;  %v124_v16 = vlaneseq }
  0x3d   :  { %1379 = vmatprep.subr.bf16.mxu0 %v1501_v0  ;;  %v1503_v2 = vld [vmem:[#allocation5 + $0x28] sm:$0xff]   ;;  %v1504_v3 = vld [vmem:[#allocation5 + $0x20] sm:$0xff]   ;;  %v1505_v5 = vld [vmem:[#allocation5 + $0x18] sm:$0xff]  }
  0x3e   :  { %1380 = vmatpush3.bf16.msra.mxu0 %v1501_v0  ;;  %v91_v4 = vld [vmem:[#allocation2] sm:$0xff]   ;;  %v1506_v6 = vld [vmem:[#allocation5 + $0x10] sm:$0xff]   ;;  %v1507_v7 = vld [vmem:[#allocation5 + $0x8] sm:$0xff]   ;;  %v1814_v17 = vshrl.u32 %v124_v16, 7 }
  0x3f   :  { %1381 = vmatprep.subr.bf16.mxu0 %v1502_v1  ;;  %1395 = vmatprep.mubr.bf16.mxu0 %v91_v4  ;;  %v1508_v8 = vld [vmem:[#allocation5] sm:$0xff]   ;;  %v93_v9 = vld [vmem:[#allocation2 + $0x8] sm:$0xff]   ;;  %v95_v10 = vld [vmem:[#allocation2 + $0x10] sm:$0xff]  }
  0x40   :  { %v97_v11 = vld [vmem:[#allocation2 + $0x18] sm:$0xff]   ;;  %v99_v12 = vld [vmem:[#allocation2 + $0x20] sm:$0xff]   ;;  %v101_v13 = vld [vmem:[#allocation2 + $0x28] sm:$0xff]   ;;  %v126_v18 = vsub.s32 0, %v1814_v17 }
  0x41   :  { %v103_v14 = vld [vmem:[#allocation2 + $0x30] sm:$0xff]   ;;  %v105_v15 = vld [vmem:[#allocation2 + $0x38] sm:$0xff]   ;;  %v1817_v19 = vld [vmem:[#allocation8] sm:$0xff] }
  0x42   :  { %1382 = vmatpush3.bf16.msra.mxu0 %v1502_v1  ;;  %v1820_v20 = vrot.slane %v1817_v19, %v126_v18  ;;  %v1517_v46 = vld [vmem:[#allocation7 + $0x38] sm:$0xff]   ;;  %v1518_v50 = vld [vmem:[#allocation7 + $0x30] sm:$0xff]   ;;  %v1519_v55 = vld [vmem:[#allocation7 + $0x28] sm:$0xff]  }
  0x43   :  { %1383 = vmatprep.subr.bf16.mxu0 %v1503_v2  ;;  %1411 = vmatprep.subr.bf16.mxu1 %v1517_v46  ;;  %v1520_v59 = vld [vmem:[#allocation7 + $0x20] sm:$0xff]   ;;  %v1521_v63 = vld [vmem:[#allocation7 + $0x18] sm:$0xff]  }
  0x44   :  { %1412 = vmatpush3.bf16.msra.mxu1 %v1517_v46 }
  0x45   :  { %1413 = vmatprep.subr.bf16.mxu1 %v1518_v50 }
  0x46   :  { %1384 = vmatpush3.bf16.msra.mxu0 %v1503_v2 }
  0x47   :  { %1385 = vmatprep.subr.bf16.mxu0 %v1504_v3 }
  0x48   :  { %1414 = vmatpush3.bf16.msra.mxu1 %v1518_v50 }
  0x49   :  { %1415 = vmatprep.subr.bf16.mxu1 %v1519_v55 }
  0x4a   :  { %1386 = vmatpush3.bf16.msra.mxu0 %v1504_v3  ;;  %v1522_v3 = vld [vmem:[#allocation7 + $0x10] sm:$0xff]  }
  0x4b   :  { %1387 = vmatprep.subr.bf16.mxu0 %v1505_v5 }
  0x4c   :  { %1416 = vmatpush3.bf16.msra.mxu1 %v1519_v55 }
  0x4d   :  { %1417 = vmatprep.subr.bf16.mxu1 %v1520_v59 }
  0x4e   :  { %1388 = vmatpush3.bf16.msra.mxu0 %v1505_v5 }
  0x4f   :  { %1389 = vmatprep.subr.bf16.mxu0 %v1506_v6 }
  0x50   :  { %1418 = vmatpush3.bf16.msra.mxu1 %v1520_v59 }
  0x51   :  { %1419 = vmatprep.subr.bf16.mxu1 %v1521_v63 }
  0x52   :  { %1390 = vmatpush3.bf16.msra.mxu0 %v1506_v6  ;;  %v1523_v6 = vld [vmem:[#allocation7 + $0x8] sm:$0xff]  }
  0x53   :  { %1391 = vmatprep.subr.bf16.mxu0 %v1507_v7 }
  0x54   :  { %1420 = vmatpush3.bf16.msra.mxu1 %v1521_v63 }
  0x55   :  { %1421 = vmatprep.subr.bf16.mxu1 %v1522_v3 }
  0x56   :  { %1392 = vmatpush3.bf16.msra.mxu0 %v1507_v7 }
  0x57   :  { %1393 = vmatprep.subr.bf16.mxu0 %v1508_v8 }
  0x58   :  { %1422 = vmatpush3.bf16.msra.mxu1 %v1522_v3 }
  0x59   :  { %1423 = vmatprep.subr.bf16.mxu1 %v1523_v6 }
  0x5a   :  { %1394 = vmatpush3.bf16.msra.mxu0 %v1508_v8 }
  0x5c   :  { %1424 = vmatpush3.bf16.msra.mxu1 %v1523_v6 }
  0x5d   :  { %1396 = vmatmul.mubr.bf16.vlgmr.msra.gmra.mxu0 %v93_v9  ;;  %v1524_v9 = vld [vmem:[#allocation7] sm:$0xff]  }
  0x5e   :  { %1399 = vmatprep.mubr.bf16.mxu0 %v95_v10  ;;  %1425 = vmatprep.subr.bf16.mxu1 %v1524_v9 }
  0x60   :  { %1426 = vmatpush3.bf16.msra.mxu1 %v1524_v9 }
  0x65   :  { %1400 = vmatmul.mubr.bf16.gmra.mxu0 %v97_v11 }
  0x66   :  { %1403 = vmatprep.mubr.bf16.mxu0 %v99_v12 }
  0x6d   :  { %1404 = vmatmul.mubr.bf16.gmra.mxu0 %v101_v13 }
  0x6e   :  { %1407 = vmatprep.mubr.bf16.mxu0 %v103_v14 }
  0x75   :  { %1408 = vmatmul.mubr.bf16.gmra.mxu0 %v105_v15 }
 0x11d   :  { %v1397_v21 = vpop.f32.mrf.mxu0 }
 0x11e   :  { %v1823_v22 = vadd.f32 %v1397_v21, %v1820_v20 }
 0x11f   :  { %v258_v23 = vpop.f32.mrf.mxu0 }
 0x120   :  { %v1826_v24 = vadd.f32 %v258_v23, %v1820_v20  ;;  %325 = vadd.xlane.f32.xlu1 %v1823_v22  ;;  %v372_v28 = vmul.f32 %v1823_v22, %v1823_v22 }
 0x121   :  { %v1398_v25 = vpop.f32.mrf.mxu0 }
 0x122   :  { %v1830_v26 = vadd.f32 %v1398_v25, %v1820_v20  ;;  %321 = vadd.xlane.f32.xlu0 %v1826_v24  ;;  %v370_v33 = vmul.f32 %v1826_v24, %v1826_v24 }
 0x123   :  { %v261_v27 = vpop.f32.mrf.mxu0 }
 0x124   :  { %327 = vadd.xlane.f32.xlu1 %v1830_v26  ;;  %v1837_v30 = vadd.f32 %v261_v27, %v1820_v20  ;;  %v373_v31 = vmul.f32 %v1830_v26, %v1830_v26 }
 0x125   :  { %v1401_v29 = vpop.f32.mrf.mxu0 }
 0x126   :  { %390 = vadd.xlane.f32.xlu0 %v372_v28  ;;  %v371_v34 = vmul.f32 %v1837_v30, %v1837_v30  ;;  %v1850_v38 = vadd.f32 %v1401_v29, %v1820_v20 }
 0x127   :  { %v274_v32 = vpop.f32.mrf.mxu0 }
 0x128   :  { %392 = vadd.xlane.f32.xlu1 %v373_v31  ;;  %v1858_v41 = vadd.f32 %v274_v32, %v1820_v20  ;;  %v376_v44 = vmul.f32 %v1850_v38, %v1850_v38 }
 0x129   :  { %v1402_v35 = vpop.f32.mrf.mxu0 }
 0x12a   :  { %386 = vadd.xlane.f32.xlu0 %v370_v33  ;;  %v1846_v36 = vadd.f32 %v1402_v35, %v1820_v20  ;;  %v374_v49 = vmul.f32 %v1858_v41, %v1858_v41 }
 0x12b   :  { %v277_v37 = vpop.f32.mrf.mxu0 }
 0x12c   :  { %388 = vadd.xlane.f32.xlu1 %v371_v34  ;;  %v1854_v39 = vadd.f32 %v277_v37, %v1820_v20  ;;  %v377_v42 = vmul.f32 %v1846_v36, %v1846_v36 }
 0x12d   :  { %v1405_v40 = vpop.f32.mrf.mxu0 }
 0x12e   :  { %323 = vadd.xlane.f32.xlu0 %v1837_v30  ;;  %v375_v45 = vmul.f32 %v1854_v39, %v1854_v39  ;;  %v1874_v52 = vadd.f32 %v1405_v40, %v1820_v20 }
 0x12f   :  { %v290_v43 = vpop.f32.mrf.mxu0 }
 0x130   :  { %335 = vadd.xlane.f32.xlu1 %v1846_v36  ;;  %v1882_v56 = vadd.f32 %v290_v43, %v1820_v20  ;;  %v380_v60 = vmul.f32 %v1874_v52, %v1874_v52 }
 0x131   :  { %v1406_v47 = vpop.f32.mrf.mxu0 }
 0x132   :  { %333 = vadd.xlane.f32.xlu0 %v1850_v38  ;;  %v1869_v48 = vadd.f32 %v1406_v47, %v1820_v20  ;;  %v378_v1 = vmul.f32 %v1882_v56, %v1882_v56 }
 0x133   :  { %v293_v51 = vpop.f32.mrf.mxu0 }
 0x134   :  { %331 = vadd.xlane.f32.xlu1 %v1854_v39  ;;  %v1878_v54 = vadd.f32 %v293_v51, %v1820_v20  ;;  %v381_v58 = vmul.f32 %v1869_v48, %v1869_v48 }
 0x135   :  { %v1409_v53 = vpop.f32.mrf.mxu0 }
 0x136   :  { %329 = vadd.xlane.f32.xlu0 %v1858_v41  ;;  %v379_v62 = vmul.f32 %v1878_v54, %v1878_v54  ;;  %v1898_v2 = vadd.f32 %v1409_v53, %v1820_v20 }
 0x137   :  { %v306_v57 = vpop.f32.mrf.mxu0 }
 0x138   :  { %400 = vadd.xlane.f32.xlu1 %v377_v42  ;;  %v1906_v7 = vadd.f32 %v306_v57, %v1820_v20  ;;  %v384_v12 = vmul.f32 %v1898_v2, %v1898_v2 }
 0x139   :  { %v1410_v61 = vpop.f32.mrf.mxu0 }
 0x13a   :  { %398 = vadd.xlane.f32.xlu0 %v376_v44  ;;  %v1893_v0 = vadd.f32 %v1410_v61, %v1820_v20  ;;  %v382_v10 = vmul.f32 %v1906_v7, %v1906_v7 }
 0x13b   :  { %v309_v4 = vpop.f32.mrf.mxu0 }
 0x13c   :  { %396 = vadd.xlane.f32.xlu1 %v375_v45  ;;  %v1902_v5 = vadd.f32 %v309_v4, %v1820_v20  ;;  %v385_v11 = vmul.f32 %v1893_v0, %v1893_v0 }
 0x13e   :  { %394 = vadd.xlane.f32.xlu0 %v374_v49  ;;  %v383_v8 = vmul.f32 %v1902_v5, %v1902_v5 }
 0x140   :  { %343 = vadd.xlane.f32.xlu1 %v1869_v48 }
 0x142   :  { %341 = vadd.xlane.f32.xlu0 %v1874_v52 }
 0x144   :  { %339 = vadd.xlane.f32.xlu1 %v1878_v54 }
 0x146   :  { %337 = vadd.xlane.f32.xlu0 %v1882_v56 }
 0x148   :  { %408 = vadd.xlane.f32.xlu1 %v381_v58 }
 0x14a   :  { %406 = vadd.xlane.f32.xlu0 %v380_v60 }
 0x14c   :  { %404 = vadd.xlane.f32.xlu1 %v379_v62 }
 0x14e   :  { %402 = vadd.xlane.f32.xlu0 %v378_v1 }
 0x150   :  { %351 = vadd.xlane.f32.xlu1 %v1893_v0 }
 0x152   :  { %349 = vadd.xlane.f32.xlu0 %v1898_v2 }
 0x154   :  { %347 = vadd.xlane.f32.xlu1 %v1902_v5 }
 0x156   :  { %345 = vadd.xlane.f32.xlu0 %v1906_v7 }
 0x158   :  { %412 = vadd.xlane.f32.xlu1 %v383_v8 }
 0x15a   :  { %410 = vadd.xlane.f32.xlu0 %v382_v10 }
 0x15c   :  { %416 = vadd.xlane.f32.xlu1 %v385_v11 }
 0x15e   :  { %414 = vadd.xlane.f32.xlu0 %v384_v12 }
 0x1a9   :  { %v326_v13 = vpop.xlane.xlu1 %325 }
 0x1aa   :  { %v1918_v15 = vmul.f32 0.0078125, %v326_v13 }
 0x1ab   :  { %v322_v14 = vpop.xlane.xlu0 %321 }
 0x1ac   :  { %v436_v21 = vmul.f32 %v1918_v15, %v1918_v15  ;;  %v1924_v23 = vmul.f32 0.0078125, %v322_v14 }
 0x1ad   :  { %v328_v16 = vpop.xlane.xlu1 %327 }
 0x1ae   :  { %v1920_v18 = vmul.f32 0.0078125, %v328_v16  ;;  %v434_v33 = vmul.f32 %v1924_v23, %v1924_v23 }
 0x1af   :  { %v391_v20 = vpop.xlane.xlu0 %390 }
 0x1b0   :  { %v420_v25 = vmul.f32 0.0078125, %v391_v20  ;;  %v437_v28 = vmul.f32 %v1920_v18, %v1920_v18 }
 0x1b1   :  { %v393_v27 = vpop.xlane.xlu1 %392 }
 0x1b2   :  { %v452_v29 = vsub.f32 %v420_v25, %v436_v21  ;;  %v421_v31 = vmul.f32 0.0078125, %v393_v27 }
 0x1b3   :  { %v387_v32 = vpop.xlane.xlu0 %386 }
 0x1b4   :  { %v468_v34 = vmax.f32 %v452_v29, 0.0  ;;  %v453_v35 = vsub.f32 %v421_v31, %v437_v28  ;;  %v418_v37 = vmul.f32 0.0078125, %v387_v32  ;;  %v485_v28 = vsub.f32 %v1830_v26, %v1920_v18 }
 0x1b5   :  { %v389_v40 = vpop.xlane.xlu1 %388  ;;  %v548_v32 = vsub.s32 1, %v1814_v17 }
 0x1b6   :  { %v469_v42 = vmax.f32 %v453_v35, 0.0  ;;  %v450_v43 = vsub.f32 %v418_v37, %v434_v33  ;;  %v500_v44 = vadd.f32 1e-05, %v468_v34  ;;  %v419_v53 = vmul.f32 0.0078125, %v389_v40 }
 0x1b7   :  { %v324_v45 = vpop.xlane.xlu0 %323 }
 0x1b8   :  { %v501_v46 = vadd.f32 1e-05, %v469_v42  ;;  %v466_v47 = vmax.f32 %v450_v43, 0.0  ;;  %v1930_v49 = vmul.f32 0.0078125, %v324_v45  ;;  %v484_v43 = vsub.f32 %v1823_v22, %v1918_v15 }
 0x1b9   :  { %v336_v50 = vpop.xlane.xlu1 %335 }
 0x1ba   :  { %1541 = vrsqrt.f32 %v501_v46  ;;  %v498_v51 = vadd.f32 1e-05, %v466_v47  ;;  %v435_v55 = vmul.f32 %v1930_v49, %v1930_v49  ;;  %v1934_v61 = vmul.f32 0.0078125, %v336_v50 }
 0x1bb   :  { %1543 = vrsqrt.f32 %v500_v44  ;;  %v334_v57 = vpop.xlane.xlu0 %333  ;;  %v482_v44 = vsub.f32 %v1826_v24, %v1924_v23  ;;  %v483_v23 = vsub.f32 %v1837_v30, %v1930_v49 }
 0x1bc   :  { %1545 = vrsqrt.f32 %v498_v51  ;;  %v451_v58 = vsub.f32 %v419_v53, %v435_v55  ;;  %v1936_v1 = vmul.f32 0.0078125, %v334_v57  ;;  %v441_v4 = vmul.f32 %v1934_v61, %v1934_v61 }
 0x1bd   :  { %v332_v59 = vpop.xlane.xlu1 %331  ;;  %v1958_v53 = vrot.slane %v1817_v19, %v548_v32  ;;  %v568_v55 = vsub.s32 2, %v1814_v17 }
 0x1be   :  { %v467_v60 = vmax.f32 %v451_v58, 0.0  ;;  %v1940_v6 = vmul.f32 0.0078125, %v332_v59  ;;  %v440_v11 = vmul.f32 %v1936_v1, %v1936_v1 }
 0x1bf   :  { %v330_v62 = vpop.xlane.xlu0 %329 }
 0x1c0   :  { %v499_v63 = vadd.f32 1e-05, %v467_v60  ;;  %v1942_v9 = vmul.f32 0.0078125, %v330_v62  ;;  %v439_v16 = vmul.f32 %v1940_v6, %v1940_v6 }
 0x1c1   :  { %v401_v3 = vpop.xlane.xlu1 %400 }
 0x1c2   :  { %1547 = vrsqrt.f32 %v499_v63  ;;  %v425_v8 = vmul.f32 0.0078125, %v401_v3  ;;  %v438_v29 = vmul.f32 %v1942_v9, %v1942_v9 }
 0x1c3   :  { %v399_v10 = vpop.xlane.xlu0 %398 }
 0x1c4   :  { %v457_v12 = vsub.f32 %v425_v8, %v441_v4  ;;  %v424_v13 = vmul.f32 0.0078125, %v399_v10  ;;  %v1968_v4 = vrot.slane %v1817_v19, %v568_v55 }
 0x1c5   :  { %v397_v14 = vpop.xlane.xlu1 %396 }
 0x1c6   :  { %v473_v20 = vmax.f32 %v457_v12, 0.0  ;;  %v456_v21 = vsub.f32 %v424_v13, %v440_v11  ;;  %v423_v25 = vmul.f32 0.0078125, %v397_v14 }
 0x1c7   :  { %v1542_v27 = vpop.eup %1541  ;;  %v395_v31 = vpop.xlane.xlu0 %394 }
 0x1c8   :  { %v1544_v33 = vpop.eup %1543  ;;  %v505_v34 = vadd.f32 1e-05, %v473_v20  ;;  %v472_v35 = vmax.f32 %v456_v21, 0.0  ;;  %v455_v37 = vsub.f32 %v423_v25, %v439_v16  ;;  %v422_v40 = vmul.f32 0.0078125, %v395_v31 }
 0x1c9   :  { %v1546_v42 = vpop.eup %1545  ;;  %v344_v45 = vpop.xlane.xlu1 %343  ;;  %v533_v26 = vmul.f32 %v1542_v27, %v485_v28  ;;  %v532_v57 = vmul.f32 %v1544_v33, %v484_v43 }
 0x1ca   :  { %1549 = vrsqrt.f32 %v505_v34  ;;  %v504_v18 = vadd.f32 1e-05, %v472_v35  ;;  %v471_v46 = vmax.f32 %v455_v37, 0.0  ;;  %v454_v47 = vsub.f32 %v422_v40, %v438_v29 }
 0x1cb   :  { %v342_v50 = vpop.xlane.xlu0 %341  ;;  %v530_v51 = vmul.f32 %v1546_v42, %v482_v44  ;;  %v553_v24 = vmul.f32 %v1958_v53, %v533_v26  ;;  %v1964_v60 = vmul.f32 0.0078125, %v344_v45  ;;  %v552_v8 = vmul.f32 %v1958_v53, %v532_v57 }
 0x1cc   :  { %1551 = vrsqrt.f32 %v504_v18  ;;  %v503_v58 = vadd.f32 1e-05, %v471_v46  ;;  %v470_v22 = vmax.f32 %v454_v47, 0.0  ;;  %v1971_v11 = vmul.f32 0.0078125, %v342_v50 }
 0x1cd   :  { %v340_v15 = vpop.xlane.xlu1 %339  ;;  %v550_v3 = vmul.f32 %v1958_v53, %v530_v51  ;;  %v573_v49 = vadd.f32 %v1968_v4, %v553_v24  ;;  %v445_v13 = vmul.f32 %v1964_v60, %v1964_v60  ;;  %v572_v27 = vadd.f32 %v1968_v4, %v552_v8 }
 0x1ce   :  { %1553 = vrsqrt.f32 %v503_v58  ;;  %v502_v59 = vadd.f32 1e-05, %v470_v22  ;;  %v1973_v12 = vmul.f32 0.0078125, %v340_v15  ;;  %v444_v28 = vmul.f32 %v1971_v11, %v1971_v11 }
 0x1cf   :  { %v1548_v62 = vpop.eup %1547  ;;  %v338_v63 = vpop.xlane.xlu0 %337  ;;  %v570_v25 = vadd.f32 %v1968_v4, %v550_v3  ;;  %v589_v35 = vmax.f32 %v573_v49, 0.0  ;;  %v489_v45 = vsub.f32 %v1846_v36, %v1934_v61  ;;  %v588_v47 = vmax.f32 %v572_v27, 0.0 }
 0x1d0   :  { %v531_v10 = vmul.f32 %v1548_v62, %v483_v23  ;;  %1555 = vrsqrt.f32 %v502_v59  ;;  %v1979_v20 = vmul.f32 0.0078125, %v338_v63  ;;  %v443_v33 = vmul.f32 %v1973_v12, %v1973_v12 }
 0x1d1   :  { %v409_v30 = vpop.xlane.xlu1 %408  ;;  %v586_v46 = vmax.f32 %v570_v25, 0.0  ;;  %v488_v22 = vsub.f32 %v1850_v38, %v1936_v1  ;;  %v603_v23 = vpack.c.bf16 %v589_v35, %v588_v47  ;;  %v487_v3 = vsub.f32 %v1854_v39, %v1940_v6 }
 0x1d2   :  { %v429_v14 = vmul.f32 0.0078125, %v409_v30  ;;  %v551_v16 = vmul.f32 %v1958_v53, %v531_v10  ;;  %v442_v26 = vmul.f32 %v1979_v20, %v1979_v20  ;;  %v486_v1 = vsub.f32 %v1858_v41, %v1942_v9 }
 0x1d3   :  { %v407_v21 = vpop.xlane.xlu0 %406 }
 0x1d4   :  { %v461_v29 = vsub.f32 %v429_v14, %v445_v13  ;;  %v428_v31 = vmul.f32 0.0078125, %v407_v21  ;;  %v571_v32 = vadd.f32 %v1968_v4, %v551_v16 }
 0x1d5   :  { %v405_v34 = vpop.xlane.xlu1 %404 }
 0x1d6   :  { %v477_v37 = vmax.f32 %v461_v29, 0.0  ;;  %v460_v40 = vsub.f32 %v428_v31, %v444_v28  ;;  %v427_v42 = vmul.f32 0.0078125, %v405_v34  ;;  %v587_v43 = vmax.f32 %v571_v32, 0.0 }
 0x1d7   :  { %v1550_v44 = vpop.eup %1549  ;;  %v403_v18 = vpop.xlane.xlu0 %402 }
 0x1d8   :  { %v509_v50 = vadd.f32 1e-05, %v477_v37  ;;  %v476_v51 = vmax.f32 %v460_v40, 0.0  ;;  %v459_v55 = vsub.f32 %v427_v42, %v443_v33  ;;  %v426_v57 = vmul.f32 0.0078125, %v403_v18 }
 0x1d9   :  { %v1552_v58 = vpop.eup %1551  ;;  %v352_v15 = vpop.xlane.xlu1 %351  ;;  %v602_v24 = vpack.c.bf16 %v587_v43, %v586_v46  ;;  %v537_v59 = vmul.f32 %v1550_v44, %v489_v45 }
 0x1da   :  { %1557 = vrsqrt.f32 %v509_v50  ;;  %v508_v36 = vadd.f32 1e-05, %v476_v51  ;;  %v475_v61 = vmax.f32 %v459_v55, 0.0  ;;  %v458_v62 = vsub.f32 %v426_v57, %v442_v26 }
 0x1db   :  { %v1554_v63 = vpop.eup %1553  ;;  %1427 = vmatprep.mubr.bf16.mxu1 %v602_v24  ;;  %v350_v8 = vpop.xlane.xlu0 %349  ;;  %v536_v10 = vmul.f32 %v1552_v58, %v488_v22  ;;  %v557_v21 = vmul.f32 %v1958_v53, %v537_v59  ;;  %v2009_v34 = vmul.f32 0.0078125, %v352_v15  ;;  %v493_v24 = vsub.f32 %v1869_v48, %v1964_v60 }
 0x1dc   :  { %1559 = vrsqrt.f32 %v508_v36  ;;  %v507_v30 = vadd.f32 1e-05, %v475_v61  ;;  %v474_v49 = vmax.f32 %v458_v62, 0.0  ;;  %1428 = vmatmul.mubr.bf16.vlgmr.msra.gmra.mxu1 %v603_v23  ;;  %v535_v14 = vmul.f32 %v1554_v63, %v487_v3 }
 0x1dd   :  { %v1556_v38 = vpop.eup %1555  ;;  %v348_v13 = vpop.xlane.xlu1 %347  ;;  %v556_v16 = vmul.f32 %v1958_v53, %v536_v10  ;;  %v577_v33 = vadd.f32 %v1968_v4, %v557_v21  ;;  %v2013_v40 = vmul.f32 0.0078125, %v350_v8  ;;  %v449_v55 = vmul.f32 %v2009_v34, %v2009_v34 }
 0x1de   :  { %1561 = vrsqrt.f32 %v507_v30  ;;  %v506_v25 = vadd.f32 1e-05, %v474_v49  ;;  %v2000_v39 = vmul.f32 0.0078125, %v348_v13  ;;  %v534_v27 = vmul.f32 %v1556_v38, %v486_v1 }
 0x1df   :  { %v346_v6 = vpop.xlane.xlu0 %345  ;;  %v555_v28 = vmul.f32 %v1958_v53, %v535_v14  ;;  %v576_v29 = vadd.f32 %v1968_v4, %v556_v16  ;;  %v593_v51 = vmax.f32 %v577_v33, 0.0  ;;  %v448_v23 = vmul.f32 %v2013_v40, %v2013_v40 }
 0x1e0   :  { %1563 = vrsqrt.f32 %v506_v25  ;;  %v2004_v31 = vmul.f32 0.0078125, %v346_v6  ;;  %v554_v9 = vmul.f32 %v1958_v53, %v534_v27  ;;  %v447_v35 = vmul.f32 %v2000_v39, %v2000_v39 }
 0x1e1   :  { %v413_v41 = vpop.xlane.xlu1 %412  ;;  %v575_v32 = vadd.f32 %v1968_v4, %v555_v28  ;;  %v592_v44 = vmax.f32 %v576_v29, 0.0  ;;  %v492_v30 = vsub.f32 %v1874_v52, %v1971_v11  ;;  %v491_v49 = vsub.f32 %v1878_v54, %v1973_v12 }
 0x1e2   :  { %v431_v37 = vmul.f32 0.0078125, %v413_v41  ;;  %v574_v43 = vadd.f32 %v1968_v4, %v554_v9  ;;  %v446_v45 = vmul.f32 %v2004_v31, %v2004_v31  ;;  %v490_v14 = vsub.f32 %v1882_v56, %v1979_v20 }
 0x1e3   :  { %v411_v42 = vpop.xlane.xlu0 %410  ;;  %v591_v50 = vmax.f32 %v575_v32, 0.0  ;;  %v605_v61 = vpack.c.bf16 %v593_v51, %v592_v44 }
 0x1e4   :  { %v463_v26 = vsub.f32 %v431_v37, %v447_v35  ;;  %v430_v18 = vmul.f32 0.0078125, %v411_v42  ;;  %v590_v47 = vmax.f32 %v574_v43, 0.0  ;;  %v495_v42 = vsub.f32 %v1902_v5, %v2000_v39 }
 0x1e5   :  { %v417_v46 = vpop.xlane.xlu1 %416  ;;  %v496_v5 = vsub.f32 %v1898_v2, %v2013_v40 }
 0x1e6   :  { %v479_v57 = vmax.f32 %v463_v26, 0.0  ;;  %v462_v58 = vsub.f32 %v430_v18, %v446_v45  ;;  %v433_v22 = vmul.f32 0.0078125, %v417_v46  ;;  %v604_v36 = vpack.c.bf16 %v591_v50, %v590_v47 }
 0x1e7   :  { %v1558_v15 = vpop.eup %1557  ;;  %v415_v59 = vpop.xlane.xlu0 %414  ;;  %v494_v26 = vsub.f32 %v1906_v7, %v2004_v31  ;;  %v497_v47 = vsub.f32 %v1893_v0, %v2009_v34 }
 0x1e8   :  { %v511_v62 = vadd.f32 1e-05, %v479_v57  ;;  %v478_v63 = vmax.f32 %v462_v58, 0.0  ;;  %v465_v3 = vsub.f32 %v433_v22, %v449_v55  ;;  %v432_v8 = vmul.f32 0.0078125, %v415_v59  ;;  %1431 = vmatprep.mubr.bf16.mxu1 %v604_v36 }
 0x1e9   :  { %v1560_v10 = vpop.eup %1559  ;;  %v541_v38 = vmul.f32 %v1558_v15, %v493_v24  ;;  %1432 = vmatmul.mubr.bf16.gmra.mxu1 %v605_v61 }
 0x1ea   :  { %1565 = vrsqrt.f32 %v511_v62  ;;  %v510_v48 = vadd.f32 1e-05, %v478_v63  ;;  %v481_v60 = vmax.f32 %v465_v3, 0.0  ;;  %v464_v1 = vsub.f32 %v432_v8, %v448_v23 }
 0x1eb   :  { %v1562_v13 = vpop.eup %1561  ;;  %v540_v16 = vmul.f32 %v1560_v10, %v492_v30  ;;  %v561_v54 = vmul.f32 %v1958_v53, %v541_v38  ;;  %v628_v62 = vsub.s32 3, %v1814_v17 }
 0x1ec   :  { %1567 = vrsqrt.f32 %v510_v48  ;;  %v513_v21 = vadd.f32 1e-05, %v481_v60  ;;  %v480_v25 = vmax.f32 %v464_v1, 0.0  ;;  %v539_v6 = vmul.f32 %v1562_v13, %v491_v49 }
 0x1ed   :  { %v1564_v52 = vpop.eup %1563  ;;  %v560_v11 = vmul.f32 %v1958_v53, %v540_v16  ;;  %v581_v41 = vadd.f32 %v1968_v4, %v561_v54  ;;  %v2056_v63 = vrot.slane %v1817_v19, %v628_v62 }
 0x1ee   :  { %1569 = vrsqrt.f32 %v513_v21  ;;  %v512_v12 = vadd.f32 1e-05, %v480_v25  ;;  %v538_v27 = vmul.f32 %v1564_v52, %v490_v14  ;;  %v559_v28 = vmul.f32 %v1958_v53, %v539_v6 }
 0x1ef   :  { %v580_v29 = vadd.f32 %v1968_v4, %v560_v11  ;;  %v597_v37 = vmax.f32 %v581_v41, 0.0 }
 0x1f0   :  { %1571 = vrsqrt.f32 %v512_v12  ;;  %v558_v56 = vmul.f32 %v1958_v53, %v538_v27  ;;  %v579_v20 = vadd.f32 %v1968_v4, %v559_v28 }
 0x1f1   :  { %v596_v32 = vmax.f32 %v580_v29, 0.0 }
 0x1f2   :  { %v578_v9 = vadd.f32 %v1968_v4, %v558_v56  ;;  %v595_v35 = vmax.f32 %v579_v20, 0.0 }
 0x1f3   :  { %v607_v45 = vpack.c.bf16 %v597_v37, %v596_v32  ;;  %v1526_v37 = vld [vmem:[#allocation10 + $0x30] sm:$0xff]  }
 0x1f4   :  { %v594_v33 = vmax.f32 %v578_v9, 0.0  ;;  %v1525_v9 = vld [vmem:[#allocation10 + $0x38] sm:$0xff]  }
 0x1f5   :  { %1443 = vmatprep.subr.bf16.mxu0 %v1525_v9  ;;  %1475 = vmatprep.subr.bf16.mxu1 %v1525_v9 }
 0x1f6   :  { %v606_v43 = vpack.c.bf16 %v595_v35, %v594_v33  ;;  %1444 = vmatpush3.bf16.msra.mxu0 %v1525_v9  ;;  %1483 = vmatpush3.bf16.msra.mxu1 %v1525_v9 }
 0x1f7   :  { %v1566_v44 = vpop.eup %1565  ;;  %1445 = vmatprep.subr.bf16.mxu0 %v1526_v37  ;;  %1476 = vmatprep.subr.bf16.mxu1 %v1526_v37 }
 0x1f8   :  { %1435 = vmatprep.mubr.bf16.mxu1 %v606_v43  ;;  %v543_v18 = vmul.f32 %v1566_v44, %v495_v42  ;;  %v1527_v44 = vld [vmem:[#allocation10 + $0x28] sm:$0xff]  }
 0x1f9   :  { %v1568_v46 = vpop.eup %1567  ;;  %1436 = vmatmul.mubr.bf16.gmra.mxu1 %v607_v45 }
 0x1fa   :  { %v542_v50 = vmul.f32 %v1568_v46, %v494_v26  ;;  %v563_v51 = vmul.f32 %v1958_v53, %v543_v18  ;;  %1446 = vmatpush3.bf16.msra.mxu0 %v1526_v37  ;;  %1484 = vmatpush3.bf16.msra.mxu1 %v1526_v37 }
 0x1fb   :  { %v1570_v55 = vpop.eup %1569  ;;  %1447 = vmatprep.subr.bf16.mxu0 %v1527_v44  ;;  %1477 = vmatprep.subr.bf16.mxu1 %v1527_v44 }
 0x1fc   :  { %v562_v39 = vmul.f32 %v1958_v53, %v542_v50  ;;  %v583_v57 = vadd.f32 %v1968_v4, %v563_v51  ;;  %v545_v58 = vmul.f32 %v1570_v55, %v497_v47  ;;  %v1528_v47 = vld [vmem:[#allocation10 + $0x20] sm:$0xff]  }
 0x1fd   :  { %v1572_v7 = vpop.eup %1571 }
 0x1fe   :  { %v582_v31 = vadd.f32 %v1968_v4, %v562_v39  ;;  %v544_v22 = vmul.f32 %v1572_v7, %v496_v5  ;;  %v565_v15 = vmul.f32 %v1958_v53, %v545_v58  ;;  %v599_v0 = vmax.f32 %v583_v57, 0.0  ;;  %1448 = vmatpush3.bf16.msra.mxu0 %v1527_v44  ;;  %1485 = vmatpush3.bf16.msra.mxu1 %v1527_v44  ;;  %v1529_v5 = vld [vmem:[#allocation10 + $0x18] sm:$0xff]   ;;  %v1530_v58 = vld [vmem:[#allocation10 + $0x10] sm:$0xff]  }
 0x1ff   :  { %1449 = vmatprep.subr.bf16.mxu0 %v1528_v47  ;;  %1478 = vmatprep.subr.bf16.mxu1 %v1528_v47 }
 0x200   :  { %v598_v24 = vmax.f32 %v582_v31, 0.0  ;;  %v564_v34 = vmul.f32 %v1958_v53, %v544_v22  ;;  %v585_v23 = vadd.f32 %v1968_v4, %v565_v15  ;;  %v1531_v15 = vld [vmem:[#allocation10 + $0x8] sm:$0xff]  }
 0x202   :  { %v608_v59 = vpack.c.bf16 %v599_v0, %v598_v24  ;;  %v584_v2 = vadd.f32 %v1968_v4, %v564_v34  ;;  %v601_v36 = vmax.f32 %v585_v23, 0.0  ;;  %1450 = vmatpush3.bf16.msra.mxu0 %v1528_v47  ;;  %1486 = vmatpush3.bf16.msra.mxu1 %v1528_v47  ;;  %v1532_v34 = vld [vmem:[#allocation10] sm:$0xff]  }
 0x203   :  { %1451 = vmatprep.subr.bf16.mxu0 %v1529_v5  ;;  %1479 = vmatprep.subr.bf16.mxu1 %v1529_v5 }
 0x204   :  { %1439 = vmatprep.mubr.bf16.mxu1 %v608_v59  ;;  %v600_v40 = vmax.f32 %v584_v2, 0.0 }
 0x206   :  { %v609_v61 = vpack.c.bf16 %v601_v36, %v600_v40  ;;  %1452 = vmatpush3.bf16.msra.mxu0 %v1529_v5  ;;  %1487 = vmatpush3.bf16.msra.mxu1 %v1529_v5 }
 0x207   :  { %1453 = vmatprep.subr.bf16.mxu0 %v1530_v58  ;;  %1480 = vmatprep.subr.bf16.mxu1 %v1530_v58 }
 0x208   :  { %1440 = vmatmul.mubr.bf16.gmra.mxu1 %v609_v61 }
 0x20a   :  { %1454 = vmatpush3.bf16.msra.mxu0 %v1530_v58  ;;  %1488 = vmatpush3.bf16.msra.mxu1 %v1530_v58 }
 0x20b   :  { %1455 = vmatprep.subr.bf16.mxu0 %v1531_v15  ;;  %1481 = vmatprep.subr.bf16.mxu1 %v1531_v15 }
 0x20e   :  { %1456 = vmatpush3.bf16.msra.mxu0 %v1531_v15  ;;  %1489 = vmatpush3.bf16.msra.mxu1 %v1531_v15  ;;  %v1001_v15 = vsub.s32 4, %v1814_v17 }
 0x20f   :  { %1457 = vmatprep.subr.bf16.mxu0 %v1532_v34  ;;  %1482 = vmatprep.subr.bf16.mxu1 %v1532_v34 }
 0x212   :  { %1458 = vmatpush3.bf16.msra.mxu0 %v1532_v34  ;;  %1490 = vmatpush3.bf16.msra.mxu1 %v1532_v34 }
 0x29c   :  { %v1429_v3 = vpop.f32.mrf.mxu1 }
 0x29d   :  { %v2059_v8 = vadd.f32 %v1429_v3, %v2056_v63 }
 0x29e   :  { %v712_v53 = vpop.f32.mrf.mxu1 }
 0x29f   :  { %779 = vadd.xlane.f32.xlu0 %v2059_v8  ;;  %v2063_v4 = vadd.f32 %v712_v53, %v2056_v63  ;;  %v825_v38 = vmul.f32 %v2059_v8, %v2059_v8 }
 0x2a0   :  { %v1430_v10 = vpop.f32.mrf.mxu1 }
 0x2a1   :  { %v2066_v30 = vadd.f32 %v1430_v10, %v2056_v63  ;;  %v823_v60 = vmul.f32 %v2063_v4, %v2063_v4 }
 0x2a2   :  { %v715_v49 = vpop.f32.mrf.mxu1 }
 0x2a3   :  { %781 = vadd.xlane.f32.xlu1 %v2066_v30  ;;  %775 = vadd.xlane.f32.xlu0 %v2063_v4  ;;  %v2071_v19 = vadd.f32 %v715_v49, %v2056_v63  ;;  %v826_v48 = vmul.f32 %v2066_v30, %v2066_v30 }
 0x2a5   :  { %v824_v16 = vmul.f32 %v2071_v19, %v2071_v19 }
 0x2a7   :  { %777 = vadd.xlane.f32.xlu1 %v2071_v19  ;;  %843 = vadd.xlane.f32.xlu0 %v825_v38 }
 0x2a9   :  { %v1433_v1 = vpop.f32.mrf.mxu1 }
 0x2aa   :  { %v2081_v14 = vadd.f32 %v1433_v1, %v2056_v63 }
 0x2ab   :  { %845 = vadd.xlane.f32.xlu1 %v826_v48  ;;  %839 = vadd.xlane.f32.xlu0 %v823_v60  ;;  %v728_v13 = vpop.f32.mrf.mxu1 }
 0x2ac   :  { %v2087_v25 = vadd.f32 %v728_v13, %v2056_v63  ;;  %v829_v54 = vmul.f32 %v2081_v14, %v2081_v14 }
 0x2ad   :  { %v1434_v21 = vpop.f32.mrf.mxu1 }
 0x2ae   :  { %v2090_v6 = vadd.f32 %v1434_v21, %v2056_v63  ;;  %v827_v28 = vmul.f32 %v2087_v25, %v2087_v25 }
 0x2af   :  { %841 = vadd.xlane.f32.xlu1 %v824_v16  ;;  %787 = vadd.xlane.f32.xlu0 %v2081_v14  ;;  %v731_v52 = vpop.f32.mrf.mxu1 }
 0x2b0   :  { %v2095_v11 = vadd.f32 %v731_v52, %v2056_v63  ;;  %v830_v27 = vmul.f32 %v2090_v6, %v2090_v6 }
 0x2b2   :  { %v828_v20 = vmul.f32 %v2095_v11, %v2095_v11 }
 0x2b3   :  { %789 = vadd.xlane.f32.xlu1 %v2090_v6  ;;  %783 = vadd.xlane.f32.xlu0 %v2087_v25 }
 0x2b7   :  { %785 = vadd.xlane.f32.xlu1 %v2095_v11  ;;  %851 = vadd.xlane.f32.xlu0 %v829_v54 }
 0x2b9   :  { %v1437_v12 = vpop.f32.mrf.mxu1 }
 0x2ba   :  { %v2105_v56 = vadd.f32 %v1437_v12, %v2056_v63 }
 0x2bb   :  { %853 = vadd.xlane.f32.xlu1 %v830_v27  ;;  %847 = vadd.xlane.f32.xlu0 %v827_v28  ;;  %v744_v29 = vpop.f32.mrf.mxu1 }
 0x2bc   :  { %v2111_v32 = vadd.f32 %v744_v29, %v2056_v63  ;;  %v833_v43 = vmul.f32 %v2105_v56, %v2105_v56 }
 0x2bd   :  { %v1438_v41 = vpop.f32.mrf.mxu1 }
 0x2be   :  { %v2114_v33 = vadd.f32 %v1438_v41, %v2056_v63  ;;  %v831_v18 = vmul.f32 %v2111_v32, %v2111_v32 }
 0x2bf   :  { %849 = vadd.xlane.f32.xlu1 %v828_v20  ;;  %795 = vadd.xlane.f32.xlu0 %v2105_v56  ;;  %v747_v35 = vpop.f32.mrf.mxu1 }
 0x2c0   :  { %v2119_v42 = vadd.f32 %v747_v35, %v2056_v63  ;;  %v834_v26 = vmul.f32 %v2114_v33, %v2114_v33 }
 0x2c2   :  { %v832_v51 = vmul.f32 %v2119_v42, %v2119_v42 }
 0x2c3   :  { %797 = vadd.xlane.f32.xlu1 %v2114_v33  ;;  %791 = vadd.xlane.f32.xlu0 %v2111_v32 }
 0x2c7   :  { %793 = vadd.xlane.f32.xlu1 %v2119_v42  ;;  %859 = vadd.xlane.f32.xlu0 %v833_v43 }
 0x2c8   :  { %v1441_v45 = vpop.f32.mrf.mxu1 }
 0x2c9   :  { %v2129_v50 = vadd.f32 %v1441_v45, %v2056_v63 }
 0x2ca   :  { %v760_v46 = vpop.f32.mrf.mxu1 }
 0x2cb   :  { %861 = vadd.xlane.f32.xlu1 %v834_v26  ;;  %855 = vadd.xlane.f32.xlu0 %v831_v18  ;;  %v2135_v39 = vadd.f32 %v760_v46, %v2056_v63  ;;  %v837_v0 = vmul.f32 %v2129_v50, %v2129_v50 }
 0x2cc   :  { %v1442_v55 = vpop.f32.mrf.mxu1 }
 0x2cd   :  { %v2138_v57 = vadd.f32 %v1442_v55, %v2056_v63  ;;  %v835_v22 = vmul.f32 %v2135_v39, %v2135_v39 }
 0x2ce   :  { %v763_v7 = vpop.f32.mrf.mxu1 }
 0x2cf   :  { %857 = vadd.xlane.f32.xlu1 %v832_v51  ;;  %803 = vadd.xlane.f32.xlu0 %v2129_v50  ;;  %v2143_v31 = vadd.f32 %v763_v7, %v2056_v63  ;;  %v838_v23 = vmul.f32 %v2138_v57, %v2138_v57 }
 0x2d1   :  { %v836_v24 = vmul.f32 %v2143_v31, %v2143_v31 }
 0x2d3   :  { %805 = vadd.xlane.f32.xlu1 %v2138_v57  ;;  %799 = vadd.xlane.f32.xlu0 %v2135_v39 }
 0x2d7   :  { %801 = vadd.xlane.f32.xlu1 %v2143_v31  ;;  %863 = vadd.xlane.f32.xlu0 %v835_v22 }
 0x2db   :  { %865 = vadd.xlane.f32.xlu1 %v836_v24  ;;  %867 = vadd.xlane.f32.xlu0 %v837_v0 }
 0x2df   :  { %869 = vadd.xlane.f32.xlu1 %v838_v23 }
 0x328   :  { %v780_v59 = vpop.xlane.xlu0 %779 }
 0x329   :  { %v809_v36 = vmul.f32 0.0078125, %v780_v59 }
 0x32b   :  { %v889_v3 = vmul.f32 %v809_v36, %v809_v36  ;;  %v937_v0 = vsub.f32 %v2059_v8, %v809_v36 }
 0x32c   :  { %v782_v2 = vpop.xlane.xlu1 %781  ;;  %v776_v40 = vpop.xlane.xlu0 %775 }
 0x32d   :  { %v2154_v61 = vmul.f32 0.0078125, %v782_v2  ;;  %v2156_v53 = vmul.f32 0.0078125, %v776_v40 }
 0x32f   :  { %v890_v38 = vmul.f32 %v2154_v61, %v2154_v61  ;;  %v887_v13 = vmul.f32 %v2156_v53, %v2156_v53 }
 0x330   :  { %v778_v62 = vpop.xlane.xlu1 %777  ;;  %v844_v63 = vpop.xlane.xlu0 %843 }
 0x331   :  { %v873_v10 = vmul.f32 0.0078125, %v844_v63  ;;  %v2160_v48 = vmul.f32 0.0078125, %v778_v62 }
 0x333   :  { %v905_v49 = vsub.f32 %v873_v10, %v889_v3  ;;  %v888_v28 = vmul.f32 %v2160_v48, %v2160_v48 }
 0x334   :  { %v846_v60 = vpop.xlane.xlu1 %845  ;;  %v840_v1 = vpop.xlane.xlu0 %839 }
 0x335   :  { %v921_v16 = vmax.f32 %v905_v49, 0.0  ;;  %v874_v21 = vmul.f32 0.0078125, %v846_v60  ;;  %v871_v52 = vmul.f32 0.0078125, %v840_v1  ;;  %v1605_v49 = vld [vmem:[#allocation8] sm:$0xff]  ;;  %v1021_v60 = vsub.s32 5, %v1814_v17 }
 0x336   :  { %v935_v17 = vsub.f32 %v2063_v4, %v2156_v53  ;;  %v936_v4 = vsub.f32 %v2071_v19, %v2160_v48 }
 0x337   :  { %v953_v54 = vadd.f32 1e-05, %v921_v16  ;;  %v906_v12 = vsub.f32 %v874_v21, %v890_v38  ;;  %v903_v27 = vsub.f32 %v871_v52, %v887_v13  ;;  %v2182_v38 = vrot.slane %v1605_v49, %v1001_v15 }
 0x338   :  { %v842_v29 = vpop.xlane.xlu1 %841  ;;  %v788_v20 = vpop.xlane.xlu0 %787  ;;  %v938_v16 = vsub.f32 %v2066_v30, %v2154_v61 }
 0x339   :  { %1573 = vrsqrt.f32 %v953_v54  ;;  %v922_v41 = vmax.f32 %v906_v12, 0.0  ;;  %v919_v9 = vmax.f32 %v903_v27, 0.0  ;;  %v872_v35 = vmul.f32 0.0078125, %v842_v29 }
 0x33a   :  { %v2166_v46 = vmul.f32 0.0078125, %v788_v20  ;;  %v2191_v20 = vrot.slane %v1605_v49, %v1021_v60 }
 0x33b   :  { %v954_v37 = vadd.f32 1e-05, %v922_v41  ;;  %v951_v43 = vadd.f32 1e-05, %v919_v9  ;;  %v904_v44 = vsub.f32 %v872_v35, %v888_v28 }
 0x33c   :  { %v790_v45 = vpop.xlane.xlu1 %789  ;;  %v784_v26 = vpop.xlane.xlu0 %783  ;;  %v893_v58 = vmul.f32 %v2166_v46, %v2166_v46 }
 0x33d   :  { %1575 = vrsqrt.f32 %v954_v37  ;;  %v920_v18 = vmax.f32 %v904_v44, 0.0  ;;  %v2168_v51 = vmul.f32 0.0078125, %v790_v45  ;;  %v2172_v7 = vmul.f32 0.0078125, %v784_v26  ;;  %v1606_v26 = vld [vmem:[#allocation2 + $0x8] sm:$0xff]  }
 0x33e   :  { %1577 = vrsqrt.f32 %v951_v43 }
 0x33f   :  { %v952_v47 = vadd.f32 1e-05, %v920_v18  ;;  %v894_v34 = vmul.f32 %v2168_v51, %v2168_v51  ;;  %v891_v40 = vmul.f32 %v2172_v7, %v2172_v7  ;;  %v1042_v18 = vunpack.c.h.bf16 %v1606_v26 }
 0x340   :  { %v786_v55 = vpop.xlane.xlu1 %785  ;;  %v852_v5 = vpop.xlane.xlu0 %851 }
 0x341   :  { %1579 = vrsqrt.f32 %v952_v47  ;;  %v877_v22 = vmul.f32 0.0078125, %v852_v5  ;;  %v2178_v23 = vmul.f32 0.0078125, %v786_v55 }
 0x343   :  { %v909_v24 = vsub.f32 %v877_v22, %v893_v58  ;;  %v892_v21 = vmul.f32 %v2178_v23, %v2178_v23  ;;  %v1607_v22 = vld [vmem:[#allocation2] sm:$0xff]  }
 0x344   :  { %v854_v59 = vpop.xlane.xlu1 %853  ;;  %v848_v2 = vpop.xlane.xlu0 %847  ;;  %v1039_v15 = vunpack.c.l.bf16 %v1607_v22  ;;  %v1040_v49 = vunpack.c.h.bf16 %v1607_v22 }
 0x345   :  { %v925_v62 = vmax.f32 %v909_v24, 0.0  ;;  %v878_v63 = vmul.f32 0.0078125, %v854_v59  ;;  %v875_v3 = vmul.f32 0.0078125, %v848_v2  ;;  %v1041_v24 = vunpack.c.l.bf16 %v1606_v26 }
 0x346   :  { %v1574_v10 = vpop.eup %1573 }
 0x347   :  { %v985_v8 = vmul.f32 %v1574_v10, %v937_v0  ;;  %v957_v36 = vadd.f32 1e-05, %v925_v62  ;;  %v910_v1 = vsub.f32 %v878_v63, %v894_v34  ;;  %v907_v13 = vsub.f32 %v875_v3, %v891_v40 }
 0x348   :  { %v850_v52 = vpop.xlane.xlu1 %849  ;;  %v796_v54 = vpop.xlane.xlu0 %795 }
 0x349   :  { %1581 = vrsqrt.f32 %v957_v36  ;;  %v926_v12 = vmax.f32 %v910_v1, 0.0  ;;  %v923_v27 = vmax.f32 %v907_v13, 0.0  ;;  %v876_v28 = vmul.f32 0.0078125, %v850_v52 }
 0x34a   :  { %v1576_v29 = vpop.eup %1575  ;;  %v1005_v41 = vmul.f32 %v2182_v38, %v985_v8  ;;  %v2194_v55 = vmul.f32 0.0078125, %v796_v54 }
 0x34b   :  { %v1578_v9 = vpop.eup %1577  ;;  %v986_v35 = vmul.f32 %v1576_v29, %v938_v16  ;;  %v958_v30 = vadd.f32 1e-05, %v926_v12  ;;  %v955_v61 = vadd.f32 1e-05, %v923_v27  ;;  %v908_v37 = vsub.f32 %v876_v28, %v892_v21 }
 0x34c   :  { %v798_v43 = vpop.xlane.xlu1 %797  ;;  %v792_v44 = vpop.xlane.xlu0 %791  ;;  %v983_v45 = vmul.f32 %v1578_v9, %v935_v17  ;;  %v1025_v34 = vadd.f32 %v2191_v20, %v1005_v41  ;;  %v897_v48 = vmul.f32 %v2194_v55, %v2194_v55  ;;  %v941_v9 = vsub.f32 %v2081_v14, %v2166_v46 }
 0x34d   :  { %1583 = vrsqrt.f32 %v958_v30  ;;  %v924_v47 = vmax.f32 %v908_v37, 0.0  ;;  %v1006_v58 = vmul.f32 %v2182_v38, %v986_v35  ;;  %v2201_v59 = vmul.f32 0.0078125, %v798_v43 }
 0x34e   :  { %v1580_v5 = vpop.eup %1579  ;;  %1585 = vrsqrt.f32 %v955_v61  ;;  %v1003_v53 = vmul.f32 %v2182_v38, %v983_v45  ;;  %v2207_v3 = vmul.f32 0.0078125, %v792_v44  ;;  %v1057_v1 = vadd.f32 %v1041_v24, %v1025_v34 }
 0x34f   :  { %v956_v0 = vadd.f32 1e-05, %v924_v47  ;;  %v984_v62 = vmul.f32 %v1580_v5, %v936_v4  ;;  %v1026_v19 = vadd.f32 %v2191_v20, %v1006_v58  ;;  %v898_v13 = vmul.f32 %v2201_v59, %v2201_v59 }
 0x350   :  { %v794_v2 = vpop.xlane.xlu1 %793  ;;  %v860_v40 = vpop.xlane.xlu0 %859  ;;  %v1023_v63 = vadd.f32 %v2191_v20, %v1003_v53  ;;  %v895_v27 = vmul.f32 %v2207_v3, %v2207_v3  ;;  %v942_v35 = vsub.f32 %v2090_v6, %v2168_v51  ;;  %v1073_v45 = vmax.f32 %v1057_v1, 0.0 }
 0x351   :  { %1587 = vrsqrt.f32 %v956_v0  ;;  %v881_v10 = vmul.f32 0.0078125, %v860_v40  ;;  %v1004_v60 = vmul.f32 %v2182_v38, %v984_v62  ;;  %v1058_v8 = vadd.f32 %v1042_v18, %v1026_v19 }
 0x352   :  { %v2212_v16 = vmul.f32 0.0078125, %v794_v2  ;;  %v1055_v12 = vadd.f32 %v1039_v15, %v1023_v63  ;;  %v939_v6 = vsub.f32 %v2087_v25, %v2172_v7  ;;  %v940_v7 = vsub.f32 %v2095_v11, %v2178_v23 }
 0x353   :  { %v913_v36 = vsub.f32 %v881_v10, %v897_v48  ;;  %v1024_v54 = vadd.f32 %v2191_v20, %v1004_v60  ;;  %v1074_v61 = vmax.f32 %v1058_v8, 0.0  ;;  %v1608_v10 = vld [vmem:[#allocation2 + $0x18] sm:$0xff]  }
 0x354   :  { %v862_v21 = vpop.xlane.xlu1 %861  ;;  %v856_v52 = vpop.xlane.xlu0 %855  ;;  %v896_v26 = vmul.f32 %v2212_v16, %v2212_v16  ;;  %v1071_v5 = vmax.f32 %v1055_v12, 0.0 }
 0x355   :  { %v929_v28 = vmax.f32 %v913_v36, 0.0  ;;  %v882_v29 = vmul.f32 0.0078125, %v862_v21  ;;  %v879_v17 = vmul.f32 0.0078125, %v856_v52  ;;  %v1056_v30 = vadd.f32 %v1040_v49, %v1024_v54 }
 0x356   :  { %v1582_v41 = vpop.eup %1581  ;;  %v1088_v15 = vpack.c.bf16 %v1074_v61, %v1073_v45  ;;  %v1046_v49 = vunpack.c.h.bf16 %v1608_v10  ;;  %v1045_v52 = vunpack.c.l.bf16 %v1608_v10 }
 0x357   :  { %v961_v37 = vadd.f32 1e-05, %v929_v28  ;;  %v914_v43 = vsub.f32 %v882_v29, %v898_v13  ;;  %v911_v44 = vsub.f32 %v879_v17, %v895_v27  ;;  %v1072_v4 = vmax.f32 %v1056_v30, 0.0  ;;  %v1609_v13 = vld [vmem:[#allocation2 + $0x10] sm:$0xff]  }
 0x358   :  { %v858_v18 = vpop.xlane.xlu1 %857  ;;  %v804_v47 = vpop.xlane.xlu0 %803  ;;  %v989_v53 = vmul.f32 %v1582_v41, %v941_v9  ;;  %v1043_v21 = vunpack.c.l.bf16 %v1609_v13  ;;  %v1044_v30 = vunpack.c.h.bf16 %v1609_v13 }
 0x359   :  { %1589 = vrsqrt.f32 %v961_v37  ;;  %v930_v58 = vmax.f32 %v914_v43, 0.0  ;;  %v927_v14 = vmax.f32 %v911_v44, 0.0  ;;  %v880_v46 = vmul.f32 0.0078125, %v858_v18 }
 0x35a   :  { %v1584_v22 = vpop.eup %1583  ;;  %v1087_v51 = vpack.c.bf16 %v1072_v4, %v1071_v5  ;;  %v1009_v48 = vmul.f32 %v2182_v38, %v989_v53  ;;  %v2232_v12 = vmul.f32 0.0078125, %v804_v47 }
 0x35b   :  { %v1586_v24 = vpop.eup %1585  ;;  %v962_v0 = vadd.f32 1e-05, %v930_v58  ;;  %v959_v34 = vadd.f32 1e-05, %v927_v14  ;;  %v912_v2 = vsub.f32 %v880_v46, %v896_v26  ;;  %v990_v40 = vmul.f32 %v1584_v22, %v942_v35 }
 0x35c   :  { %1459 = vmatprep.mubr.bf16.mxu0 %v1087_v51  ;;  %v806_v62 = vpop.xlane.xlu1 %805  ;;  %v800_v63 = vpop.xlane.xlu0 %799  ;;  %v987_v19 = vmul.f32 %v1586_v24, %v939_v6  ;;  %v1029_v41 = vadd.f32 %v2191_v20, %v1009_v48  ;;  %v901_v45 = vmul.f32 %v2232_v12, %v2232_v12  ;;  %v945_v6 = vsub.f32 %v2105_v56, %v2194_v55 }
 0x35d   :  { %1591 = vrsqrt.f32 %v962_v0  ;;  %v928_v60 = vmax.f32 %v912_v2, 0.0  ;;  %1460 = vmatmul.mubr.bf16.vlgmr.msra.gmra.mxu0 %v1088_v15  ;;  %v2226_v8 = vmul.f32 0.0078125, %v800_v63  ;;  %v1010_v1 = vmul.f32 %v2182_v38, %v990_v40 }
 0x35e   :  { %v1588_v25 = vpop.eup %1587  ;;  %1593 = vrsqrt.f32 %v959_v34  ;;  %v1007_v36 = vmul.f32 %v2182_v38, %v987_v19  ;;  %v2242_v43 = vmul.f32 0.0078125, %v806_v62  ;;  %v1061_v4 = vadd.f32 %v1045_v52, %v1029_v41 }
 0x35f   :  { %v960_v54 = vadd.f32 1e-05, %v928_v60  ;;  %v988_v29 = vmul.f32 %v1588_v25, %v940_v7  ;;  %v1030_v11 = vadd.f32 %v2191_v20, %v1010_v1  ;;  %v899_v23 = vmul.f32 %v2226_v8, %v2226_v8 }
 0x360   :  { %v802_v27 = vpop.xlane.xlu1 %801  ;;  %v864_v28 = vpop.xlane.xlu0 %863  ;;  %v1027_v17 = vadd.f32 %v2191_v20, %v1007_v36  ;;  %v946_v51 = vsub.f32 %v2114_v33, %v2201_v59  ;;  %v902_v0 = vmul.f32 %v2242_v43, %v2242_v43  ;;  %v1077_v10 = vmax.f32 %v1061_v4, 0.0 }
 0x361   :  { %1595 = vrsqrt.f32 %v960_v54  ;;  %v2239_v9 = vmul.f32 0.0078125, %v802_v27  ;;  %v883_v35 = vmul.f32 0.0078125, %v864_v28  ;;  %v1008_v61 = vmul.f32 %v2182_v38, %v988_v29 }
 0x362   :  { %v1062_v37 = vadd.f32 %v1046_v49, %v1030_v11  ;;  %v1059_v5 = vadd.f32 %v1043_v21, %v1027_v17  ;;  %v943_v33 = vsub.f32 %v2111_v32, %v2207_v3  ;;  %v944_v27 = vsub.f32 %v2119_v42, %v2212_v16  ;;  %v1610_v3 = vld [vmem:[#allocation2 + $0x28] sm:$0xff]   ;;  %v1611_v11 = vld [vmem:[#allocation2 + $0x20] sm:$0xff]  }
 0x363   :  { %v915_v44 = vsub.f32 %v883_v35, %v899_v23  ;;  %v1028_v47 = vadd.f32 %v2191_v20, %v1008_v61  ;;  %v900_v53 = vmul.f32 %v2239_v9, %v2239_v9  ;;  %v1050_v17 = vunpack.c.h.bf16 %v1610_v3 }
 0x364   :  { %v866_v26 = vpop.xlane.xlu1 %865  ;;  %v868_v18 = vpop.xlane.xlu0 %867  ;;  %v1078_v24 = vmax.f32 %v1062_v37, 0.0  ;;  %v1075_v19 = vmax.f32 %v1059_v5, 0.0  ;;  %v1047_v23 = vunpack.c.l.bf16 %v1611_v11  ;;  %v1049_v37 = vunpack.c.l.bf16 %v1610_v3 }
 0x365   :  { %v931_v58 = vmax.f32 %v915_v44, 0.0  ;;  %v884_v14 = vmul.f32 0.0078125, %v866_v26  ;;  %v885_v46 = vmul.f32 0.0078125, %v868_v18  ;;  %v1060_v15 = vadd.f32 %v1044_v30, %v1028_v47 }
 0x366   :  { %v1590_v22 = vpop.eup %1589  ;;  %v1090_v25 = vpack.c.bf16 %v1078_v24, %v1077_v10  ;;  %v1048_v44 = vunpack.c.h.bf16 %v1611_v11  ;;  %v947_v4 = vsub.f32 %v2135_v39, %v2226_v8  ;;  %v1612_v39 = vld [vmem:[#allocation2 + $0x30] sm:$0xff]  }
 0x367   :  { %v963_v34 = vadd.f32 1e-05, %v931_v58  ;;  %v916_v2 = vsub.f32 %v884_v14, %v900_v53  ;;  %v917_v40 = vsub.f32 %v885_v46, %v901_v45  ;;  %v993_v62 = vmul.f32 %v1590_v22, %v945_v6 }
 0x368   :  { %v870_v63 = vpop.xlane.xlu1 %869  ;;  %v1076_v48 = vmax.f32 %v1060_v15, 0.0  ;;  %v948_v15 = vsub.f32 %v2143_v31, %v2239_v9  ;;  %v1051_v8 = vunpack.c.l.bf16 %v1612_v39  ;;  %v1052_v10 = vunpack.c.h.bf16 %v1612_v39 }
 0x369   :  { %1597 = vrsqrt.f32 %v963_v34  ;;  %v932_v49 = vmax.f32 %v916_v2, 0.0  ;;  %v933_v60 = vmax.f32 %v917_v40, 0.0  ;;  %v886_v56 = vmul.f32 0.0078125, %v870_v63 }
 0x36a   :  { %v1592_v55 = vpop.eup %1591  ;;  %v1089_v59 = vpack.c.bf16 %v1076_v48, %v1075_v19  ;;  %v1013_v54 = vmul.f32 %v2182_v38, %v993_v62  ;;  %v949_v2 = vsub.f32 %v2129_v50, %v2232_v12  ;;  %v950_v31 = vsub.f32 %v2138_v57, %v2242_v43  ;;  %v1613_v50 = vld [vmem:[#allocation2 + $0x38] sm:$0xff]  }
 0x36b   :  { %v1594_v7 = vpop.eup %1593  ;;  %v994_v36 = vmul.f32 %v1592_v55, %v946_v51  ;;  %v964_v1 = vadd.f32 1e-05, %v932_v49  ;;  %v965_v13 = vadd.f32 1e-05, %v933_v60  ;;  %v918_v21 = vsub.f32 %v886_v56, %v902_v0 }
 0x36c   :  { %1463 = vmatprep.mubr.bf16.mxu0 %v1089_v59  ;;  %v991_v52 = vmul.f32 %v1594_v7, %v943_v33  ;;  %v1033_v16 = vadd.f32 %v2191_v20, %v1013_v54  ;;  %v1053_v12 = vunpack.c.l.bf16 %v1613_v50 }
 0x36d   :  { %1599 = vrsqrt.f32 %v964_v1  ;;  %v934_v28 = vmax.f32 %v918_v21, 0.0  ;;  %1464 = vmatmul.mubr.bf16.gmra.mxu0 %v1090_v25  ;;  %v1014_v29 = vmul.f32 %v2182_v38, %v994_v36  ;;  %v1054_v25 = vunpack.c.h.bf16 %v1613_v50 }
 0x36e   :  { %v1596_v32 = vpop.eup %1595  ;;  %1601 = vrsqrt.f32 %v965_v13  ;;  %v1011_v41 = vmul.f32 %v2182_v38, %v991_v52  ;;  %v1065_v5 = vadd.f32 %v1049_v37, %v1033_v16 }
 0x36f   :  { %v966_v35 = vadd.f32 1e-05, %v934_v28  ;;  %v992_v30 = vmul.f32 %v1596_v32, %v944_v27  ;;  %v1034_v61 = vadd.f32 %v2191_v20, %v1014_v29  ;;  %v1322_v29 = vld [vmem:[%s2294_s5] ss:$0 sm:$0xff]  ;;  %s1749_s5 = smov [#allocation11]  }
 0x370   :  { %v1031_v42 = vadd.f32 %v2191_v20, %v1011_v41  ;;  %v1081_v51 = vmax.f32 %v1065_v5, 0.0  ;;  %s1284_s21 = sshll.u32 %s1749_s5, 4  ;;  %s1285_s21 = int_to_ptr.vmem [resolvable:$true] %s1284_s21 }
 0x371   :  { %1603 = vrsqrt.f32 %v966_v35  ;;  %v1012_v45 = vmul.f32 %v2182_v38, %v992_v30  ;;  %v1066_v26 = vadd.f32 %v1050_v17, %v1034_v61  ;;  %s1714_s22 = scalar_lea.vmem %s1285_s21, 2048  ;;  %p1719_p12 = scmp.lt.s32.totalorder %s1285_s21, %s1285_s21 }
 0x372   :  { %v1063_v47 = vadd.f32 %v1047_v23, %v1031_v42  ;;  %p1715_p11 = scmp.ne.s32.totalorder %s1285_s21, %s1714_s22  ;;  %p1720_p13 = scmp.lt.s32.totalorder %s1714_s22, %s1714_s22 }
 0x373   :  { %v1032_v18 = vadd.f32 %v2191_v20, %v1012_v45  ;;  %v1082_v14 = vmax.f32 %v1066_v26, 0.0 }
 0x374   :  { %v1079_v46 = vmax.f32 %v1063_v47, 0.0  ;;  %p1721_p0 = por %p1720_p13, %p1719_p12 }
 0x375   :  { %v1064_v53 = vadd.f32 %v1048_v44, %v1032_v18  ;;  %v1092_v40 = vpack.c.bf16 %v1082_v14, %v1081_v51 }
 0x376   :  { %v1598_v58 = vpop.eup %1597  ;;  %p1722_p1 = pnand %p1721_p0, %p1715_p11 }
 0x377   :  { %v1080_v22 = vmax.f32 %v1064_v53, 0.0  ;;  %v995_v6 = vmul.f32 %v1598_v58, %v947_v4 }
 0x379   :  { %v1091_v24 = vpack.c.bf16 %v1080_v22, %v1079_v46  ;;  %v1015_v0 = vmul.f32 %v2182_v38, %v995_v6 }
 0x37a   :  { %v1600_v34 = vpop.eup %1599 }
 0x37b   :  { %v1602_v62 = vpop.eup %1601  ;;  %1467 = vmatprep.mubr.bf16.mxu1 %v1091_v24  ;;  %v996_v63 = vmul.f32 %v1600_v34, %v948_v15  ;;  %v1035_v19 = vadd.f32 %v2191_v20, %v1015_v0 }
 0x37c   :  { %1468 = vmatmul.mubr.bf16.vlgmr.msra.gmra.mxu1 %v1092_v40  ;;  %v997_v48 = vmul.f32 %v1602_v62, %v949_v2 }
 0x37d   :  { %v1016_v9 = vmul.f32 %v2182_v38, %v996_v63  ;;  %v1067_v55 = vadd.f32 %v1051_v8, %v1035_v19 }
 0x37e   :  { %v1604_v49 = vpop.eup %1603  ;;  %v1017_v60 = vmul.f32 %v2182_v38, %v997_v48 }
 0x37f   :  { %v1036_v56 = vadd.f32 %v2191_v20, %v1016_v9  ;;  %v998_v33 = vmul.f32 %v1604_v49, %v950_v31  ;;  %v1083_v1 = vmax.f32 %v1067_v55, 0.0 }
 0x380   :  { %v1037_v59 = vadd.f32 %v2191_v20, %v1017_v60 }
 0x381   :  { %v1068_v7 = vadd.f32 %v1052_v10, %v1036_v56  ;;  %v1018_v36 = vmul.f32 %v2182_v38, %v998_v33 }
 0x382   :  { %v1069_v43 = vadd.f32 %v1053_v12, %v1037_v59 }
 0x383   :  { %v1084_v13 = vmax.f32 %v1068_v7, 0.0  ;;  %v1038_v57 = vadd.f32 %v2191_v20, %v1018_v36 }
 0x384   :  { %v1085_v54 = vmax.f32 %v1069_v43, 0.0 }
 0x385   :  { %v1093_v21 = vpack.c.bf16 %v1084_v13, %v1083_v1  ;;  %v1070_v52 = vadd.f32 %v1054_v25, %v1038_v57 }
 0x387   :  { %1471 = vmatprep.mubr.bf16.mxu1 %v1093_v21  ;;  %v1086_v27 = vmax.f32 %v1070_v52, 0.0 }
 0x389   :  { %v1094_v28 = vpack.c.bf16 %v1086_v27, %v1085_v54 }
 0x38b   :  { %1472 = vmatmul.mubr.bf16.gmra.mxu1 %v1094_v28 }
 0x41d   :  { %v1461_v32 = vpop.f32.mrf.mxu0 }
 0x41e   :  { %v1209_v3 = vadd.f32 %v1461_v32, %v1322_v29 }
 0x41f   :  { %v1200_v17 = vpop.f32.mrf.mxu0 }
 0x420   :  { %1265 = vst [vmem:[#allocation11 + $0x10] sm:$0xff] %v1209_v3  ;;  %v1201_v38 = vadd.f32 %v1322_v29, %v1200_v17 }
 0x421   :  { %v1462_v41 = vpop.f32.mrf.mxu0 }
 0x422   :  { %1263 = vst [vmem:[#allocation11] sm:$0xff] %v1201_v38  ;;  %v1212_v20 = vadd.f32 %v1462_v41, %v1322_v29 }
 0x423   :  { %v1203_v11 = vpop.f32.mrf.mxu0 }
 0x424   :  { %1266 = vst [vmem:[#allocation11 + $0x18] sm:$0xff] %v1212_v20  ;;  %v1204_v23 = vadd.f32 %v1322_v29, %v1203_v11 }
 0x426   :  { %1264 = vst [vmem:[#allocation11 + $0x8] sm:$0xff] %v1204_v23 }
 0x42d   :  { %v1465_v35 = vpop.f32.mrf.mxu0 }
 0x42e   :  { %v1225_v30 = vadd.f32 %v1465_v35, %v1322_v29 }
 0x42f   :  { %v1216_v61 = vpop.f32.mrf.mxu0 }
 0x430   :  { %1269 = vst [vmem:[#allocation11 + $0x30] sm:$0xff] %v1225_v30  ;;  %v1217_v37 = vadd.f32 %v1322_v29, %v1216_v61 }
 0x431   :  { %v1466_v42 = vpop.f32.mrf.mxu0 }
 0x432   :  { %1267 = vst [vmem:[#allocation11 + $0x20] sm:$0xff] %v1217_v37  ;;  %v1228_v16 = vadd.f32 %v1466_v42, %v1322_v29 }
 0x433   :  { %v1219_v44 = vpop.f32.mrf.mxu0 }
 0x434   :  { %1270 = vst [vmem:[#allocation11 + $0x38] sm:$0xff] %v1228_v16  ;;  %v1220_v45 = vadd.f32 %v1322_v29, %v1219_v44 }
 0x436   :  { %1268 = vst [vmem:[#allocation11 + $0x28] sm:$0xff] %v1220_v45 }
 0x43c   :  { %v1469_v26 = vpop.f32.mrf.mxu1 }
 0x43d   :  { %v1241_v18 = vadd.f32 %v1469_v26, %v1322_v29 }
 0x43e   :  { %v1232_v47 = vpop.f32.mrf.mxu1 }
 0x43f   :  { %1273 = vst [vmem:[#allocation11 + $0x50] sm:$0xff] %v1241_v18  ;;  %v1233_v5 = vadd.f32 %v1322_v29, %v1232_v47 }
 0x440   :  { %v1470_v4 = vpop.f32.mrf.mxu1 }
 0x441   :  { %1271 = vst [vmem:[#allocation11 + $0x40] sm:$0xff] %v1233_v5  ;;  %v1244_v53 = vadd.f32 %v1470_v4, %v1322_v29 }
 0x442   :  { %v1235_v58 = vpop.f32.mrf.mxu1 }
 0x443   :  { %1274 = vst [vmem:[#allocation11 + $0x58] sm:$0xff] %v1244_v53  ;;  %v1236_v14 = vadd.f32 %v1322_v29, %v1235_v58 }
 0x445   :  { %1272 = vst [vmem:[#allocation11 + $0x48] sm:$0xff] %v1236_v14 }
 0x44b   :  { %v1473_v46 = vpop.f32.mrf.mxu1 }
 0x44c   :  { %v1257_v22 = vadd.f32 %v1473_v46, %v1322_v29 }
 0x44d   :  { %v1248_v6 = vpop.f32.mrf.mxu1 }
 0x44e   :  { %1277 = vst [vmem:[#allocation11 + $0x70] sm:$0xff] %v1257_v22  ;;  %v1249_v51 = vadd.f32 %v1322_v29, %v1248_v6 }
 0x44f   :  { %v1474_v15 = vpop.f32.mrf.mxu1 }
 0x450   :  { %1275 = vst [vmem:[#allocation11 + $0x60] sm:$0xff] %v1249_v51  ;;  %v1260_v24 = vadd.f32 %v1474_v15, %v1322_v29 }
 0x451   :  { %v1251_v0 = vpop.f32.mrf.mxu1 }
 0x452   :  { %1278 = vst [vmem:[#allocation11 + $0x78] sm:$0xff] %v1260_v24  ;;  %v1252_v34 = vadd.f32 %v1322_v29, %v1251_v0 }
 0x454   :  { %1276 = vst [vmem:[#allocation11 + $0x68] sm:$0xff] %v1252_v34 }
 0x455   :  { %1725 = shalt.err (!%p1722_p1)
}
 0x456   :  { %s1750_s23 = smov 128   ;;  %s1751_s24 = smov 8  }
 0x457   :  { %1290 = dma.vmem_to_hbm [thread:$0]  %s1285_s21, 2048, %s2295_s6, [#allocation4], %s1750_s23, %s1750_s23, %s1751_s24  }
 0x458   :  { %1740 = dma.done.wait [#allocation4], 2048  }
 0x459   :  { %1741 = vsyncadd [#allocation4], 4294965248 }
 0x45a   :  { %1294 = vsyncpa [#allocation3], 1 }
 0x45b   :  { %1295 = vsyncpa [#allocation6], 1 }
 0x45c   :  { %1296 = vsyncpa [#allocation9], 1 }
 0x45d   :  { %1297 = vsyncpa [#allocation4], 1 }

</bundles_post_ra>
